<compile_context>
chip_gen: v7x
topology: tpu7x:2x2x1
jax: 0.10.0
libtpu: 0.0.40
codegen_flags: <defaults>
</compile_context>

<pallas_src>
import functools
import math

import jax
import jax.numpy as jnp
from jax.experimental import pallas as pl
from jax.experimental.pallas import tpu as pltpu


LANE = 128                      # channel padding target (lane width)
_VMEM_LIMIT = 32 * 1024 * 1024  # explicit scoped-VMEM budget (safe on v5e/v6e/v7x)


def _round_up(x, m):
    return ((x + m - 1) // m) * m


def _choose_tile(l, target=256):
    """Largest L-tile that is a multiple of 8 and divides l (else the full l)."""
    if l <= target:
        return l
    t = target - target % 8
    while t >= 8:
        if l % t == 0:
            return t
        t -= 8
    return l


def bn_fold(gamma, beta, running_mean, running_var, eps=1e-5):
    scale = gamma / jnp.sqrt(running_var + eps)
    bias = beta - running_mean * scale
    return scale, bias


# ----------------------------------------------------------------------------
# Pallas kernels
# ----------------------------------------------------------------------------
def _conv_bn_act_kernel(*args, taps, n_phase, tl, act, with_abs_gap):
    """Fused Conv1d(K taps) + folded-BN + activation (+ optional sum_L |y|).

    args = [phase_refs...(n_phase), w_ref, scale_ref, bias_ref,
            o_ref (, gap_ref)]
    Grid = (B, L_out // tl); the gap output accumulates across the L axis.
    """
    phase_refs = args[:n_phase]
    w_ref, scale_ref, bias_ref = args[n_phase:n_phase + 3]
    if with_abs_gap:
        o_ref, gap_ref = args[n_phase + 3:]
    else:
        (o_ref,) = args[n_phase + 3:]

    j = pl.program_id(1)
    base = j * tl
    if tl % 8 == 0:
        base = pl.multiple_of(base, 8)        # aligned dynamic window start

    c_out = o_ref.shape[-1]
    acc = jnp.zeros((tl, c_out), jnp.float32)
    for p in range(n_phase):
        offs = [off for (pi, off) in taps if pi == p]
        win = tl + max(offs)
        # One aligned dynamic load per phase; taps are static in-register slices.
        xw = phase_refs[p][0, pl.ds(base, win), :]            # (win, C_in) bf16
        for k, (pi, off) in enumerate(taps):
            if pi != p:
                continue
            acc = acc + jnp.dot(xw[off:off + tl, :], w_ref[k],
                                preferred_element_type=jnp.float32)

    y = acc * scale_ref[...] + bias_ref[...]                  # folded BN, f32
    if act == "relu":
        y = jnp.maximum(y, 0.0)
    o_ref[0] = y.astype(o_ref.dtype)

    if with_abs_gap:
        @pl.when(j == 0)
        def _():
            gap_ref[...] = jnp.zeros_like(gap_ref)
        gap_ref[...] += jnp.sum(jnp.abs(y), axis=0, keepdims=True)[None]


def _shrink_add_relu_kernel(*args, with_gap):
    """out = relu((r - clip(r, -t, t)) + s)   (+ optional sum_L out)."""
    if with_gap:
        r_ref, s_ref, t_ref, o_ref, gap_ref = args
    else:
        r_ref, s_ref, t_ref, o_ref = args

    j = pl.program_id(1)
    r = r_ref[0].astype(jnp.float32)
    s = s_ref[0].astype(jnp.float32)
    t = t_ref[0]                                              # (1, C), t >= 0
    y = r - jnp.clip(r, -t, t) + s                            # soft-threshold + residual
    y = jnp.maximum(y, 0.0)
    o_ref[0] = y.astype(o_ref.dtype)

    if with_gap:
        @pl.when(j == 0)
        def _():
            gap_ref[...] = jnp.zeros_like(gap_ref)
        gap_ref[...] += jnp.sum(y, axis=0, keepdims=True)[None]


# ----------------------------------------------------------------------------
# Kernel wrappers
# ----------------------------------------------------------------------------
def conv1d_bn_act(x, w, bn, *, stride, padding, act,
                  with_abs_gap=False, out_dtype=jnp.bfloat16):
    """Conv1d(bias=False) + eval-mode BatchNorm1d + optional ReLU, NLC layout.

    x: (B, L, C_in_x) bf16/f32, channels may be zero-padded.
    w: (C_out, C_in, K) PyTorch layout.
    Returns (B, L_out, C_out_pad); if with_abs_gap also (B, 1, C_out_pad) = sum_L |y|.
    """
    B, L, c_in_x = x.shape
    c_out, c_in_w, K = w.shape
    c_out_p = _round_up(c_out, LANE)

    # Weights -> (K, C_in_x, C_out_pad) bf16, zero-padded so padded channels stay 0.
    wt = jnp.transpose(w, (2, 1, 0))
    wt = jnp.pad(wt, ((0, 0), (0, c_in_x - c_in_w), (0, c_out_p - c_out)))
    wt = wt.astype(jnp.bfloat16)

    scale, bias = bn_fold(*bn)
    scale = jnp.pad(scale, (0, c_out_p - c_out)).reshape(1, c_out_p).astype(jnp.float32)
    bias = jnp.pad(bias, (0, c_out_p - c_out)).reshape(1, c_out_p).astype(jnp.float32)

    x = x.astype(jnp.bfloat16)
    if padding:
        x = jnp.pad(x, ((0, 0), (padding, padding), (0, 0)))
    l_pad = L + 2 * padding
    l_out = (l_pad - K) // stride + 1

    # Split the padded input into `stride` phases so every in-kernel slice is
    # contiguous: tap k reads phase (k % stride) at row offset k // stride.
    needed = sorted({k % stride for k in range(K)})
    phases = [x[:, p::stride, :] for p in needed]
    taps = tuple((needed.index(k % stride), k // stride) for k in range(K))

    tl = _choose_tile(l_out)
    grid = (B, l_out // tl)

    in_specs = [pl.BlockSpec((1, ph.shape[1], c_in_x), lambda b, j: (b, 0, 0))
                for ph in phases]
    in_specs += [
        pl.BlockSpec((K, c_in_x, c_out_p), lambda b, j: (0, 0, 0)),
        pl.BlockSpec((1, c_out_p), lambda b, j: (0, 0)),
        pl.BlockSpec((1, c_out_p), lambda b, j: (0, 0)),
    ]
    if with_abs_gap:
        out_shape = (jax.ShapeDtypeStruct((B, l_out, c_out_p), out_dtype),
                     jax.ShapeDtypeStruct((B, 1, c_out_p), jnp.float32))
        out_specs = (pl.BlockSpec((1, tl, c_out_p), lambda b, j: (b, j, 0)),
                     pl.BlockSpec((1, 1, c_out_p), lambda b, j: (b, 0, 0)))
        dims = ("parallel", "arbitrary")      # gap reduces over the L axis
    else:
        out_shape = jax.ShapeDtypeStruct((B, l_out, c_out_p), out_dtype)
        out_specs = pl.BlockSpec((1, tl, c_out_p), lambda b, j: (b, j, 0))
        dims = ("parallel", "parallel")

    kernel = functools.partial(_conv_bn_act_kernel, taps=taps, n_phase=len(phases),
                               tl=tl, act=act, with_abs_gap=with_abs_gap)
    return pl.pallas_call(
        kernel,
        grid=grid,
        in_specs=in_specs,
        out_specs=out_specs,
        out_shape=out_shape,
        compiler_params=pltpu.CompilerParams(
            dimension_semantics=dims, vmem_limit_bytes=_VMEM_LIMIT),
    )(*phases, wt, scale, bias)


def shrink_add_relu(r, s, thresh, *, with_gap=False, out_dtype=jnp.bfloat16):
    """relu(soft_threshold(r, thresh) + s); optionally also sum_L of the output."""
    B, L, C = r.shape
    tl = _choose_tile(L)
    grid = (B, L // tl)
    t3 = jnp.broadcast_to(thresh.astype(jnp.float32).reshape(B, 1, 1), (B, 1, C))

    in_specs = [
        pl.BlockSpec((1, tl, C), lambda b, j: (b, j, 0)),
        pl.BlockSpec((1, tl, C), lambda b, j: (b, j, 0)),
        pl.BlockSpec((1, 1, C), lambda b, j: (b, 0, 0)),
    ]
    if with_gap:
        out_shape = (jax.ShapeDtypeStruct((B, L, C), out_dtype),
                     jax.ShapeDtypeStruct((B, 1, C), jnp.float32))
        out_specs = (pl.BlockSpec((1, tl, C), lambda b, j: (b, j, 0)),
                     pl.BlockSpec((1, 1, C), lambda b, j: (b, 0, 0)))
        dims = ("parallel", "arbitrary")
    else:
        out_shape = jax.ShapeDtypeStruct((B, L, C), out_dtype)
        out_specs = pl.BlockSpec((1, tl, C), lambda b, j: (b, j, 0))
        dims = ("parallel", "parallel")

    return pl.pallas_call(
        functools.partial(_shrink_add_relu_kernel, with_gap=with_gap),
        grid=grid,
        in_specs=in_specs,
        out_specs=out_specs,
        out_shape=out_shape,
        compiler_params=pltpu.CompilerParams(
            dimension_semantics=dims, vmem_limit_bytes=_VMEM_LIMIT),
    )(r.astype(jnp.bfloat16), s.astype(jnp.bfloat16), t3)


# ----------------------------------------------------------------------------
# Parameters (PyTorch-matching init)
# ----------------------------------------------------------------------------
def init_params(key, num_block=(1, 1), out_channel=5):
    keys = iter(jax.random.split(key, 64))

    def bn_params(c):
        return (jnp.ones((c,), jnp.float32), jnp.zeros((c,), jnp.float32),
                jnp.zeros((c,), jnp.float32), jnp.ones((c,), jnp.float32))

    def conv_w(k, c_out, c_in, ks):  # kaiming_normal_, mode='fan_out', relu
        std = math.sqrt(2.0 / (c_out * ks))
        return std * jax.random.normal(k, (c_out, c_in, ks), jnp.float32)

    def linear(k, c_out, c_in):      # PyTorch default Linear init
        bound = 1.0 / math.sqrt(c_in)
        kw, kb = jax.random.split(k)
        w = jax.random.uniform(kw, (c_out, c_in), jnp.float32, -bound, bound)
        b = jax.random.uniform(kb, (c_out,), jnp.float32, -bound, bound)
        return w, b

    params = {
        "conv1_w": conv_w(next(keys), 32, 3, 3),
        "conv1_bn": bn_params(32),
    }
    in_ch = 32
    layers = []
    for out_ch, nb, stride0 in [(64, num_block[0], 1), (128, num_block[1], 2)]:
        blocks = []
        for s in [stride0] + [1] * (nb - 1):
            bp = {"stride": s}
            bp["conv1_w"] = conv_w(next(keys), out_ch, in_ch, 3)
            bp["bn1"] = bn_params(out_ch)
            bp["conv2_w"] = conv_w(next(keys), out_ch, out_ch, 3)
            bp["bn2"] = bn_params(out_ch)
            bp["sh_fc1_w"], bp["sh_fc1_b"] = linear(next(keys), out_ch, out_ch)
            bp["sh_bn"] = bn_params(out_ch)
            bp["sh_fc2_w"], bp["sh_fc2_b"] = linear(next(keys), 1, out_ch)
            if s != 1 or in_ch != out_ch:
                bp["sc_w"] = conv_w(next(keys), out_ch, in_ch, 1)
                bp["sc_bn"] = bn_params(out_ch)
            blocks.append(bp)
            in_ch = out_ch
        layers.append(blocks)
    params["layers"] = layers
    params["fc_w"], params["fc_b"] = linear(next(keys), out_channel, in_ch)
    return params


# ----------------------------------------------------------------------------
# Forward pass
# ----------------------------------------------------------------------------
def basic_block(x, p, *, with_gap=False):
    """DRSN-CS BasicBlock, NLC layout, channels zero-padded to 128."""
    stride = p["stride"]
    c_out = p["conv1_w"].shape[0]

    # residual branch: conv-bn-relu, conv-bn  (|.|-GAP fused into conv2 epilogue)
    r = conv1d_bn_act(x, p["conv1_w"], p["bn1"], stride=stride, padding=1, act="relu")
    r, gap_sum = conv1d_bn_act(r, p["conv2_w"], p["bn2"], stride=1, padding=1,
                               act=None, with_abs_gap=True)
    l2 = r.shape[1]

    # channel-shared shrinkage threshold head: tiny (B, C) math -> plain XLA
    gap = gap_sum[:, 0, :c_out] / l2                            # mean_L |r|
    average = jnp.mean(gap, axis=1, keepdims=True)              # (B, 1)
    s_bn, b_bn = bn_fold(*p["sh_bn"])
    h = jnp.maximum((gap @ p["sh_fc1_w"].T + p["sh_fc1_b"]) * s_bn + b_bn, 0.0)
    alpha = jax.nn.sigmoid(h @ p["sh_fc2_w"].T + p["sh_fc2_b"])  # (B, 1)
    thresh = average * alpha                                    # (B, 1), >= 0

    # shortcut branch
    if "sc_w" in p:
        s = conv1d_bn_act(x, p["sc_w"], p["sc_bn"], stride=stride, padding=0, act=None)
    else:
        s = x

    # soft-threshold + residual add + ReLU (fused elementwise kernel;
    # the last block also emits sum_L for the final AdaptiveAvgPool1d).
    return shrink_add_relu(r, s, thresh, with_gap=with_gap)


def rsnet_forward(params, x):
    """x: (B, 3, L) NCL (PyTorch layout) -> logits (B, out_channel)."""
    x = jnp.transpose(x, (0, 2, 1))                  # single layout change -> NLC
    out = conv1d_bn_act(x, params["conv1_w"], params["conv1_bn"],
                        stride=1, padding=1, act="relu")
    blocks = [bp for layer in params["layers"] for bp in layer]
    gap_sum = None
    for i, bp in enumerate(blocks):
        is_last = i == len(blocks) - 1
        res = basic_block(out, bp, with_gap=is_last)
        if is_last:
            out, gap_sum = res
        else:
            out = res
    l_final = out.shape[1]
    pooled = gap_sum[:, 0, :] / l_final              # AdaptiveAvgPool1d(1) + flatten (fused)
    # final Linear (128 -> out_channel): lane-sparse tiny matmul, leave to XLA
    logits = pooled @ params["fc_w"].T + params["fc_b"]
    return logits.astype(jnp.float32)


# ----------------------------------------------------------------------------
if __name__ == "__main__":
    key = jax.random.PRNGKey(0)
    pkey, xkey = jax.random.split(key)
    params = init_params(pkey, num_block=(1, 1), out_channel=5)
    x = jax.random.normal(xkey, (2, 3, 16), jnp.float32)     # (B, C_in=3, L)
    fwd = jax.jit(lambda inp: rsnet_forward(params, inp))
    out = jax.block_until_ready(fwd(x))
    assert out.shape == (2, 5) and out.dtype == jnp.float32
    print("KERNEL_OK")
</pallas_src>

<mosaic_0001>
module attributes {stable_mosaic.version = 11 : i64} {
  func.func @_conv_bn_act_kernel(%arg0: i32, %arg1: i32, %arg2: memref<1x18x128xbf16, #tpu.memory_space<vmem>>, %arg3: memref<3x128x128xbf16, #tpu.memory_space<vmem>>, %arg4: memref<1x128xf32, #tpu.memory_space<vmem>>, %arg5: memref<1x128xf32, #tpu.memory_space<vmem>>, %arg6: memref<1x16x128xbf16, #tpu.memory_space<vmem>>) attributes {dimension_semantics = [#tpu.dimension_semantics<parallel>, #tpu.dimension_semantics<parallel>], iteration_bounds = array<i64: 2, 1>, scalar_prefetch = 0 : i64, scratch_operands = 0 : i64, tpu.core_type = #tpu.core_type<tc>, window_params = [{transform_indices = @transform_0, window_bounds = array<i64: 1, 18, 128>}, {pipeline_mode = #tpu.pipeline_mode<synchronous>, transform_indices = @transform_1, window_bounds = array<i64: 3, 128, 128>}, {pipeline_mode = #tpu.pipeline_mode<synchronous>, transform_indices = @transform_2, window_bounds = array<i64: 1, 128>}, {pipeline_mode = #tpu.pipeline_mode<synchronous>, transform_indices = @transform_3, window_bounds = array<i64: 1, 128>}, {transform_indices = @transform_4, window_bounds = array<i64: 1, 16, 128>}]} {
    %c16_i32 = arith.constant 16 : i32
    %0 = arith.muli %arg1, %c16_i32 : i32
    %1 = tpu.assume_multiple %0, 8 : i32
    %cst = arith.constant 0.000000e+00 : f32
    %2 = vector.broadcast %cst : f32 to vector<16x128xf32>
    %c0 = arith.constant 0 : index
    %3 = arith.index_cast %1 : i32 to index
    %c0_0 = arith.constant 0 : index
    %4 = vector.load %arg2[%c0, %3, %c0_0] : memref<1x18x128xbf16, #tpu.memory_space<vmem>>, vector<1x18x128xbf16>
    %5 = vector.shape_cast %4 : vector<1x18x128xbf16> to vector<18x128xbf16>
    %6 = vector.extract_strided_slice %5 {offsets = [0, 0], sizes = [16, 128], strides = [1, 1]} : vector<18x128xbf16> to vector<16x128xbf16>
    %c0_1 = arith.constant 0 : index
    %c0_2 = arith.constant 0 : index
    %c0_3 = arith.constant 0 : index
    %7 = vector.load %arg3[%c0_1, %c0_2, %c0_3] : memref<3x128x128xbf16, #tpu.memory_space<vmem>>, vector<1x128x128xbf16>
    %8 = vector.shape_cast %7 : vector<1x128x128xbf16> to vector<128x128xbf16>
    %cst_4 = arith.constant dense<0.000000e+00> : vector<16x128xf32>
    %9 = tpu.matmul %6, %8, %cst_4 {dimension_numbers = #tpu.dot_dimension_numbers<[1], [0], [0], [1], [0, 0, 1, 1], [], []>} : vector<16x128xbf16>, vector<128x128xbf16>, vector<16x128xf32> -> vector<16x128xf32>
    %10 = arith.addf %2, %9 : vector<16x128xf32>
    %11 = vector.extract_strided_slice %5 {offsets = [1, 0], sizes = [16, 128], strides = [1, 1]} : vector<18x128xbf16> to vector<16x128xbf16>
    %c1 = arith.constant 1 : index
    %c0_5 = arith.constant 0 : index
    %c0_6 = arith.constant 0 : index
    %12 = vector.load %arg3[%c1, %c0_5, %c0_6] : memref<3x128x128xbf16, #tpu.memory_space<vmem>>, vector<1x128x128xbf16>
    %13 = vector.shape_cast %12 : vector<1x128x128xbf16> to vector<128x128xbf16>
    %cst_7 = arith.constant dense<0.000000e+00> : vector<16x128xf32>
    %14 = tpu.matmul %11, %13, %cst_7 {dimension_numbers = #tpu.dot_dimension_numbers<[1], [0], [0], [1], [0, 0, 1, 1], [], []>} : vector<16x128xbf16>, vector<128x128xbf16>, vector<16x128xf32> -> vector<16x128xf32>
    %15 = arith.addf %10, %14 : vector<16x128xf32>
    %16 = vector.extract_strided_slice %5 {offsets = [2, 0], sizes = [16, 128], strides = [1, 1]} : vector<18x128xbf16> to vector<16x128xbf16>
    %c2 = arith.constant 2 : index
    %c0_8 = arith.constant 0 : index
    %c0_9 = arith.constant 0 : index
    %17 = vector.load %arg3[%c2, %c0_8, %c0_9] : memref<3x128x128xbf16, #tpu.memory_space<vmem>>, vector<1x128x128xbf16>
    %18 = vector.shape_cast %17 : vector<1x128x128xbf16> to vector<128x128xbf16>
    %cst_10 = arith.constant dense<0.000000e+00> : vector<16x128xf32>
    %19 = tpu.matmul %16, %18, %cst_10 {dimension_numbers = #tpu.dot_dimension_numbers<[1], [0], [0], [1], [0, 0, 1, 1], [], []>} : vector<16x128xbf16>, vector<128x128xbf16>, vector<16x128xf32> -> vector<16x128xf32>
    %20 = arith.addf %15, %19 : vector<16x128xf32>
    %c0_11 = arith.constant 0 : index
    %c0_12 = arith.constant 0 : index
    %21 = vector.load %arg4[%c0_11, %c0_12] : memref<1x128xf32, #tpu.memory_space<vmem>>, vector<1x128xf32>
    %22 = vector.broadcast %21 : vector<1x128xf32> to vector<16x128xf32>
    %23 = arith.mulf %20, %22 : vector<16x128xf32>
    %c0_13 = arith.constant 0 : index
    %c0_14 = arith.constant 0 : index
    %24 = vector.load %arg5[%c0_13, %c0_14] : memref<1x128xf32, #tpu.memory_space<vmem>>, vector<1x128xf32>
    %25 = vector.broadcast %24 : vector<1x128xf32> to vector<16x128xf32>
    %26 = arith.addf %23, %25 : vector<16x128xf32>
    %cst_15 = arith.constant 0.000000e+00 : f32
    %27 = vector.broadcast %cst_15 : f32 to vector<16x128xf32>
    %28 = arith.maximumf %26, %27 : vector<16x128xf32>
    %29 = arith.truncf %28 : vector<16x128xf32> to vector<16x128xbf16>
    %c0_16 = arith.constant 0 : index
    %c0_17 = arith.constant 0 : index
    %c0_18 = arith.constant 0 : index
    %30 = vector.load %arg6[%c0_16, %c0_17, %c0_18] : memref<1x16x128xbf16, #tpu.memory_space<vmem>>, vector<1x16x128xbf16>
    %31 = vector.shape_cast %30 : vector<1x16x128xbf16> to vector<16x128xbf16>
    %32 = vector.shape_cast %29 : vector<16x128xbf16> to vector<1x16x128xbf16>
    tpu.vector_store %arg6[%c0_16, %c0_17, %c0_18], %32 {strides = array<i32>} : memref<1x16x128xbf16, #tpu.memory_space<vmem>>, vector<1x16x128xbf16>,
    return
  }
  func.func @transform_0(%arg0: i32, %arg1: i32) -> (i32, i32, i32) {
    %c0_i32 = arith.constant 0 : i32
    %c0_i32_0 = arith.constant 0 : i32
    %c0_i32_1 = arith.constant 0 : i32
    return %arg0, %c0_i32, %c0_i32_0 : i32, i32, i32
  }
  func.func @transform_1(%arg0: i32, %arg1: i32) -> (i32, i32, i32) {
    %c0_i32 = arith.constant 0 : i32
    %c0_i32_0 = arith.constant 0 : i32
    %c0_i32_1 = arith.constant 0 : i32
    %c0_i32_2 = arith.constant 0 : i32
    return %c0_i32, %c0_i32_0, %c0_i32_1 : i32, i32, i32
  }
  func.func @transform_2(%arg0: i32, %arg1: i32) -> (i32, i32) {
    %c0_i32 = arith.constant 0 : i32
    %c0_i32_0 = arith.constant 0 : i32
    %c0_i32_1 = arith.constant 0 : i32
    return %c0_i32, %c0_i32_0 : i32, i32
  }
  func.func @transform_3(%arg0: i32, %arg1: i32) -> (i32, i32) {
    %c0_i32 = arith.constant 0 : i32
    %c0_i32_0 = arith.constant 0 : i32
    %c0_i32_1 = arith.constant 0 : i32
    return %c0_i32, %c0_i32_0 : i32, i32
  }
  func.func @transform_4(%arg0: i32, %arg1: i32) -> (i32, i32, i32) {
    %c0_i32 = arith.constant 0 : i32
    %c0_i32_0 = arith.constant 0 : i32
    return %arg0, %arg1, %c0_i32 : i32, i32, i32
  }
}

module attributes {stable_mosaic.version = 11 : i64} {
  func.func @_conv_bn_act_kernel(%arg0: i32, %arg1: i32, %arg2: memref<1x16x128xbf16, #tpu.memory_space<vmem>>, %arg3: memref<1x128x128xbf16, #tpu.memory_space<vmem>>, %arg4: memref<1x128xf32, #tpu.memory_space<vmem>>, %arg5: memref<1x128xf32, #tpu.memory_space<vmem>>, %arg6: memref<1x16x128xbf16, #tpu.memory_space<vmem>>) attributes {dimension_semantics = [#tpu.dimension_semantics<parallel>, #tpu.dimension_semantics<parallel>], iteration_bounds = array<i64: 2, 1>, scalar_prefetch = 0 : i64, scratch_operands = 0 : i64, tpu.core_type = #tpu.core_type<tc>, window_params = [{transform_indices = @transform_0, window_bounds = array<i64: 1, 16, 128>}, {pipeline_mode = #tpu.pipeline_mode<synchronous>, transform_indices = @transform_1, window_bounds = array<i64: 1, 128, 128>}, {pipeline_mode = #tpu.pipeline_mode<synchronous>, transform_indices = @transform_2, window_bounds = array<i64: 1, 128>}, {pipeline_mode = #tpu.pipeline_mode<synchronous>, transform_indices = @transform_3, window_bounds = array<i64: 1, 128>}, {transform_indices = @transform_4, window_bounds = array<i64: 1, 16, 128>}]} {
    %c16_i32 = arith.constant 16 : i32
    %0 = arith.muli %arg1, %c16_i32 : i32
    %1 = tpu.assume_multiple %0, 8 : i32
    %cst = arith.constant 0.000000e+00 : f32
    %2 = vector.broadcast %cst : f32 to vector<16x128xf32>
    %c0 = arith.constant 0 : index
    %3 = arith.index_cast %1 : i32 to index
    %c0_0 = arith.constant 0 : index
    %4 = vector.load %arg2[%c0, %3, %c0_0] : memref<1x16x128xbf16, #tpu.memory_space<vmem>>, vector<1x16x128xbf16>
    %5 = vector.shape_cast %4 : vector<1x16x128xbf16> to vector<16x128xbf16>
    %c0_1 = arith.constant 0 : index
    %c0_2 = arith.constant 0 : index
    %c0_3 = arith.constant 0 : index
    %6 = vector.load %arg3[%c0_1, %c0_2, %c0_3] : memref<1x128x128xbf16, #tpu.memory_space<vmem>>, vector<1x128x128xbf16>
    %7 = vector.shape_cast %6 : vector<1x128x128xbf16> to vector<128x128xbf16>
    %cst_4 = arith.constant dense<0.000000e+00> : vector<16x128xf32>
    %8 = tpu.matmul %5, %7, %cst_4 {dimension_numbers = #tpu.dot_dimension_numbers<[1], [0], [0], [1], [0, 0, 1, 1], [], []>} : vector<16x128xbf16>, vector<128x128xbf16>, vector<16x128xf32> -> vector<16x128xf32>
    %9 = arith.addf %2, %8 : vector<16x128xf32>
    %c0_5 = arith.constant 0 : index
    %c0_6 = arith.constant 0 : index
    %10 = vector.load %arg4[%c0_5, %c0_6] : memref<1x128xf32, #tpu.memory_space<vmem>>, vector<1x128xf32>
    %11 = vector.broadcast %10 : vector<1x128xf32> to vector<16x128xf32>
    %12 = arith.mulf %9, %11 : vector<16x128xf32>
    %c0_7 = arith.constant 0 : index
    %c0_8 = arith.constant 0 : index
    %13 = vector.load %arg5[%c0_7, %c0_8] : memref<1x128xf32, #tpu.memory_space<vmem>>, vector<1x128xf32>
    %14 = vector.broadcast %13 : vector<1x128xf32> to vector<16x128xf32>
    %15 = arith.addf %12, %14 : vector<16x128xf32>
    %16 = arith.truncf %15 : vector<16x128xf32> to vector<16x128xbf16>
    %c0_9 = arith.constant 0 : index
    %c0_10 = arith.constant 0 : index
    %c0_11 = arith.constant 0 : index
    %17 = vector.load %arg6[%c0_9, %c0_10, %c0_11] : memref<1x16x128xbf16, #tpu.memory_space<vmem>>, vector<1x16x128xbf16>
    %18 = vector.shape_cast %17 : vector<1x16x128xbf16> to vector<16x128xbf16>
    %19 = vector.shape_cast %16 : vector<16x128xbf16> to vector<1x16x128xbf16>
    tpu.vector_store %arg6[%c0_9, %c0_10, %c0_11], %19 {strides = array<i32>} : memref<1x16x128xbf16, #tpu.memory_space<vmem>>, vector<1x16x128xbf16>,
    return
  }
  func.func @transform_0(%arg0: i32, %arg1: i32) -> (i32, i32, i32) {
    %c0_i32 = arith.constant 0 : i32
    %c0_i32_0 = arith.constant 0 : i32
    %c0_i32_1 = arith.constant 0 : i32
    return %arg0, %c0_i32, %c0_i32_0 : i32, i32, i32
  }
  func.func @transform_1(%arg0: i32, %arg1: i32) -> (i32, i32, i32) {
    %c0_i32 = arith.constant 0 : i32
    %c0_i32_0 = arith.constant 0 : i32
    %c0_i32_1 = arith.constant 0 : i32
    %c0_i32_2 = arith.constant 0 : i32
    return %c0_i32, %c0_i32_0, %c0_i32_1 : i32, i32, i32
  }
  func.func @transform_2(%arg0: i32, %arg1: i32) -> (i32, i32) {
    %c0_i32 = arith.constant 0 : i32
    %c0_i32_0 = arith.constant 0 : i32
    %c0_i32_1 = arith.constant 0 : i32
    return %c0_i32, %c0_i32_0 : i32, i32
  }
  func.func @transform_3(%arg0: i32, %arg1: i32) -> (i32, i32) {
    %c0_i32 = arith.constant 0 : i32
    %c0_i32_0 = arith.constant 0 : i32
    %c0_i32_1 = arith.constant 0 : i32
    return %c0_i32, %c0_i32_0 : i32, i32
  }
  func.func @transform_4(%arg0: i32, %arg1: i32) -> (i32, i32, i32) {
    %c0_i32 = arith.constant 0 : i32
    %c0_i32_0 = arith.constant 0 : i32
    return %arg0, %arg1, %c0_i32 : i32, i32, i32
  }
}

module attributes {stable_mosaic.version = 11 : i64} {
  func.func @_conv_bn_act_kernel(%arg0: i32, %arg1: i32, %arg2: memref<1x18x3xbf16, #tpu.memory_space<vmem>>, %arg3: memref<3x3x128xbf16, #tpu.memory_space<vmem>>, %arg4: memref<1x128xf32, #tpu.memory_space<vmem>>, %arg5: memref<1x128xf32, #tpu.memory_space<vmem>>, %arg6: memref<1x16x128xbf16, #tpu.memory_space<vmem>>) attributes {dimension_semantics = [#tpu.dimension_semantics<parallel>, #tpu.dimension_semantics<parallel>], iteration_bounds = array<i64: 2, 1>, scalar_prefetch = 0 : i64, scratch_operands = 0 : i64, tpu.core_type = #tpu.core_type<tc>, window_params = [{transform_indices = @transform_0, window_bounds = array<i64: 1, 18, 3>}, {pipeline_mode = #tpu.pipeline_mode<synchronous>, transform_indices = @transform_1, window_bounds = array<i64: 3, 3, 128>}, {pipeline_mode = #tpu.pipeline_mode<synchronous>, transform_indices = @transform_2, window_bounds = array<i64: 1, 128>}, {pipeline_mode = #tpu.pipeline_mode<synchronous>, transform_indices = @transform_3, window_bounds = array<i64: 1, 128>}, {transform_indices = @transform_4, window_bounds = array<i64: 1, 16, 128>}]} {
    %c16_i32 = arith.constant 16 : i32
    %0 = arith.muli %arg1, %c16_i32 : i32
    %1 = tpu.assume_multiple %0, 8 : i32
    %cst = arith.constant 0.000000e+00 : f32
    %2 = vector.broadcast %cst : f32 to vector<16x128xf32>
    %c0 = arith.constant 0 : index
    %3 = arith.index_cast %1 : i32 to index
    %c0_0 = arith.constant 0 : index
    %4 = vector.load %arg2[%c0, %3, %c0_0] : memref<1x18x3xbf16, #tpu.memory_space<vmem>>, vector<1x18x3xbf16>
    %5 = vector.shape_cast %4 : vector<1x18x3xbf16> to vector<18x3xbf16>
    %6 = vector.extract_strided_slice %5 {offsets = [0, 0], sizes = [16, 3], strides = [1, 1]} : vector<18x3xbf16> to vector<16x3xbf16>
    %c0_1 = arith.constant 0 : index
    %c0_2 = arith.constant 0 : index
    %c0_3 = arith.constant 0 : index
    %7 = vector.load %arg3[%c0_1, %c0_2, %c0_3] : memref<3x3x128xbf16, #tpu.memory_space<vmem>>, vector<1x3x128xbf16>
    %8 = vector.shape_cast %7 : vector<1x3x128xbf16> to vector<3x128xbf16>
    %cst_4 = arith.constant dense<0.000000e+00> : vector<16x128xf32>
    %9 = tpu.matmul %6, %8, %cst_4 {dimension_numbers = #tpu.dot_dimension_numbers<[1], [0], [0], [1], [0, 0, 1, 1], [], []>} : vector<16x3xbf16>, vector<3x128xbf16>, vector<16x128xf32> -> vector<16x128xf32>
    %10 = arith.addf %2, %9 : vector<16x128xf32>
    %11 = vector.extract_strided_slice %5 {offsets = [1, 0], sizes = [16, 3], strides = [1, 1]} : vector<18x3xbf16> to vector<16x3xbf16>
    %c1 = arith.constant 1 : index
    %c0_5 = arith.constant 0 : index
    %c0_6 = arith.constant 0 : index
    %12 = vector.load %arg3[%c1, %c0_5, %c0_6] : memref<3x3x128xbf16, #tpu.memory_space<vmem>>, vector<1x3x128xbf16>
    %13 = vector.shape_cast %12 : vector<1x3x128xbf16> to vector<3x128xbf16>
    %cst_7 = arith.constant dense<0.000000e+00> : vector<16x128xf32>
    %14 = tpu.matmul %11, %13, %cst_7 {dimension_numbers = #tpu.dot_dimension_numbers<[1], [0], [0], [1], [0, 0, 1, 1], [], []>} : vector<16x3xbf16>, vector<3x128xbf16>, vector<16x128xf32> -> vector<16x128xf32>
    %15 = arith.addf %10, %14 : vector<16x128xf32>
    %16 = vector.extract_strided_slice %5 {offsets = [2, 0], sizes = [16, 3], strides = [1, 1]} : vector<18x3xbf16> to vector<16x3xbf16>
    %c2 = arith.constant 2 : index
    %c0_8 = arith.constant 0 : index
    %c0_9 = arith.constant 0 : index
    %17 = vector.load %arg3[%c2, %c0_8, %c0_9] : memref<3x3x128xbf16, #tpu.memory_space<vmem>>, vector<1x3x128xbf16>
    %18 = vector.shape_cast %17 : vector<1x3x128xbf16> to vector<3x128xbf16>
    %cst_10 = arith.constant dense<0.000000e+00> : vector<16x128xf32>
    %19 = tpu.matmul %16, %18, %cst_10 {dimension_numbers = #tpu.dot_dimension_numbers<[1], [0], [0], [1], [0, 0, 1, 1], [], []>} : vector<16x3xbf16>, vector<3x128xbf16>, vector<16x128xf32> -> vector<16x128xf32>
    %20 = arith.addf %15, %19 : vector<16x128xf32>
    %c0_11 = arith.constant 0 : index
    %c0_12 = arith.constant 0 : index
    %21 = vector.load %arg4[%c0_11, %c0_12] : memref<1x128xf32, #tpu.memory_space<vmem>>, vector<1x128xf32>
    %22 = vector.broadcast %21 : vector<1x128xf32> to vector<16x128xf32>
    %23 = arith.mulf %20, %22 : vector<16x128xf32>
    %c0_13 = arith.constant 0 : index
    %c0_14 = arith.constant 0 : index
    %24 = vector.load %arg5[%c0_13, %c0_14] : memref<1x128xf32, #tpu.memory_space<vmem>>, vector<1x128xf32>
    %25 = vector.broadcast %24 : vector<1x128xf32> to vector<16x128xf32>
    %26 = arith.addf %23, %25 : vector<16x128xf32>
    %cst_15 = arith.constant 0.000000e+00 : f32
    %27 = vector.broadcast %cst_15 : f32 to vector<16x128xf32>
    %28 = arith.maximumf %26, %27 : vector<16x128xf32>
    %29 = arith.truncf %28 : vector<16x128xf32> to vector<16x128xbf16>
    %c0_16 = arith.constant 0 : index
    %c0_17 = arith.constant 0 : index
    %c0_18 = arith.constant 0 : index
    %30 = vector.load %arg6[%c0_16, %c0_17, %c0_18] : memref<1x16x128xbf16, #tpu.memory_space<vmem>>, vector<1x16x128xbf16>
    %31 = vector.shape_cast %30 : vector<1x16x128xbf16> to vector<16x128xbf16>
    %32 = vector.shape_cast %29 : vector<16x128xbf16> to vector<1x16x128xbf16>
    tpu.vector_store %arg6[%c0_16, %c0_17, %c0_18], %32 {strides = array<i32>} : memref<1x16x128xbf16, #tpu.memory_space<vmem>>, vector<1x16x128xbf16>,
    return
  }
  func.func @transform_0(%arg0: i32, %arg1: i32) -> (i32, i32, i32) {
    %c0_i32 = arith.constant 0 : i32
    %c0_i32_0 = arith.constant 0 : i32
    %c0_i32_1 = arith.constant 0 : i32
    return %arg0, %c0_i32, %c0_i32_0 : i32, i32, i32
  }
  func.func @transform_1(%arg0: i32, %arg1: i32) -> (i32, i32, i32) {
    %c0_i32 = arith.constant 0 : i32
    %c0_i32_0 = arith.constant 0 : i32
    %c0_i32_1 = arith.constant 0 : i32
    %c0_i32_2 = arith.constant 0 : i32
    return %c0_i32, %c0_i32_0, %c0_i32_1 : i32, i32, i32
  }
  func.func @transform_2(%arg0: i32, %arg1: i32) -> (i32, i32) {
    %c0_i32 = arith.constant 0 : i32
    %c0_i32_0 = arith.constant 0 : i32
    %c0_i32_1 = arith.constant 0 : i32
    return %c0_i32, %c0_i32_0 : i32, i32
  }
  func.func @transform_3(%arg0: i32, %arg1: i32) -> (i32, i32) {
    %c0_i32 = arith.constant 0 : i32
    %c0_i32_0 = arith.constant 0 : i32
    %c0_i32_1 = arith.constant 0 : i32
    return %c0_i32, %c0_i32_0 : i32, i32
  }
  func.func @transform_4(%arg0: i32, %arg1: i32) -> (i32, i32, i32) {
    %c0_i32 = arith.constant 0 : i32
    %c0_i32_0 = arith.constant 0 : i32
    return %arg0, %arg1, %c0_i32 : i32, i32, i32
  }
}

module attributes {stable_mosaic.version = 11 : i64} {
  func.func @_conv_bn_act_kernel(%arg0: i32, %arg1: i32, %arg2: memref<1x18x128xbf16, #tpu.memory_space<vmem>>, %arg3: memref<3x128x128xbf16, #tpu.memory_space<vmem>>, %arg4: memref<1x128xf32, #tpu.memory_space<vmem>>, %arg5: memref<1x128xf32, #tpu.memory_space<vmem>>, %arg6: memref<1x16x128xbf16, #tpu.memory_space<vmem>>, %arg7: memref<1x1x128xf32, #tpu.memory_space<vmem>>) attributes {dimension_semantics = [#tpu.dimension_semantics<parallel>, #tpu.dimension_semantics<arbitrary>], iteration_bounds = array<i64: 2, 1>, scalar_prefetch = 0 : i64, scratch_operands = 0 : i64, tpu.core_type = #tpu.core_type<tc>, window_params = [{transform_indices = @transform_0, window_bounds = array<i64: 1, 18, 128>}, {pipeline_mode = #tpu.pipeline_mode<synchronous>, transform_indices = @transform_1, window_bounds = array<i64: 3, 128, 128>}, {pipeline_mode = #tpu.pipeline_mode<synchronous>, transform_indices = @transform_2, window_bounds = array<i64: 1, 128>}, {pipeline_mode = #tpu.pipeline_mode<synchronous>, transform_indices = @transform_3, window_bounds = array<i64: 1, 128>}, {transform_indices = @transform_4, window_bounds = array<i64: 1, 16, 128>}, {transform_indices = @transform_5, window_bounds = array<i64: 1, 1, 128>}]} {
    %c16_i32 = arith.constant 16 : i32
    %0 = arith.muli %arg1, %c16_i32 : i32
    %1 = tpu.assume_multiple %0, 8 : i32
    %cst = arith.constant 0.000000e+00 : f32
    %2 = vector.broadcast %cst : f32 to vector<16x128xf32>
    %c0 = arith.constant 0 : index
    %3 = arith.index_cast %1 : i32 to index
    %c0_0 = arith.constant 0 : index
    %4 = vector.load %arg2[%c0, %3, %c0_0] : memref<1x18x128xbf16, #tpu.memory_space<vmem>>, vector<1x18x128xbf16>
    %5 = vector.shape_cast %4 : vector<1x18x128xbf16> to vector<18x128xbf16>
    %6 = vector.extract_strided_slice %5 {offsets = [0, 0], sizes = [16, 128], strides = [1, 1]} : vector<18x128xbf16> to vector<16x128xbf16>
    %c0_1 = arith.constant 0 : index
    %c0_2 = arith.constant 0 : index
    %c0_3 = arith.constant 0 : index
    %7 = vector.load %arg3[%c0_1, %c0_2, %c0_3] : memref<3x128x128xbf16, #tpu.memory_space<vmem>>, vector<1x128x128xbf16>
    %8 = vector.shape_cast %7 : vector<1x128x128xbf16> to vector<128x128xbf16>
    %cst_4 = arith.constant dense<0.000000e+00> : vector<16x128xf32>
    %9 = tpu.matmul %6, %8, %cst_4 {dimension_numbers = #tpu.dot_dimension_numbers<[1], [0], [0], [1], [0, 0, 1, 1], [], []>} : vector<16x128xbf16>, vector<128x128xbf16>, vector<16x128xf32> -> vector<16x128xf32>
    %10 = arith.addf %2, %9 : vector<16x128xf32>
    %11 = vector.extract_strided_slice %5 {offsets = [1, 0], sizes = [16, 128], strides = [1, 1]} : vector<18x128xbf16> to vector<16x128xbf16>
    %c1 = arith.constant 1 : index
    %c0_5 = arith.constant 0 : index
    %c0_6 = arith.constant 0 : index
    %12 = vector.load %arg3[%c1, %c0_5, %c0_6] : memref<3x128x128xbf16, #tpu.memory_space<vmem>>, vector<1x128x128xbf16>
    %13 = vector.shape_cast %12 : vector<1x128x128xbf16> to vector<128x128xbf16>
    %cst_7 = arith.constant dense<0.000000e+00> : vector<16x128xf32>
    %14 = tpu.matmul %11, %13, %cst_7 {dimension_numbers = #tpu.dot_dimension_numbers<[1], [0], [0], [1], [0, 0, 1, 1], [], []>} : vector<16x128xbf16>, vector<128x128xbf16>, vector<16x128xf32> -> vector<16x128xf32>
    %15 = arith.addf %10, %14 : vector<16x128xf32>
    %16 = vector.extract_strided_slice %5 {offsets = [2, 0], sizes = [16, 128], strides = [1, 1]} : vector<18x128xbf16> to vector<16x128xbf16>
    %c2 = arith.constant 2 : index
    %c0_8 = arith.constant 0 : index
    %c0_9 = arith.constant 0 : index
    %17 = vector.load %arg3[%c2, %c0_8, %c0_9] : memref<3x128x128xbf16, #tpu.memory_space<vmem>>, vector<1x128x128xbf16>
    %18 = vector.shape_cast %17 : vector<1x128x128xbf16> to vector<128x128xbf16>
    %cst_10 = arith.constant dense<0.000000e+00> : vector<16x128xf32>
    %19 = tpu.matmul %16, %18, %cst_10 {dimension_numbers = #tpu.dot_dimension_numbers<[1], [0], [0], [1], [0, 0, 1, 1], [], []>} : vector<16x128xbf16>, vector<128x128xbf16>, vector<16x128xf32> -> vector<16x128xf32>
    %20 = arith.addf %15, %19 : vector<16x128xf32>
    %c0_11 = arith.constant 0 : index
    %c0_12 = arith.constant 0 : index
    %21 = vector.load %arg4[%c0_11, %c0_12] : memref<1x128xf32, #tpu.memory_space<vmem>>, vector<1x128xf32>
    %22 = vector.broadcast %21 : vector<1x128xf32> to vector<16x128xf32>
    %23 = arith.mulf %20, %22 : vector<16x128xf32>
    %c0_13 = arith.constant 0 : index
    %c0_14 = arith.constant 0 : index
    %24 = vector.load %arg5[%c0_13, %c0_14] : memref<1x128xf32, #tpu.memory_space<vmem>>, vector<1x128xf32>
    %25 = vector.broadcast %24 : vector<1x128xf32> to vector<16x128xf32>
    %26 = arith.addf %23, %25 : vector<16x128xf32>
    %27 = arith.truncf %26 : vector<16x128xf32> to vector<16x128xbf16>
    %c0_15 = arith.constant 0 : index
    %c0_16 = arith.constant 0 : index
    %c0_17 = arith.constant 0 : index
    %28 = vector.load %arg6[%c0_15, %c0_16, %c0_17] : memref<1x16x128xbf16, #tpu.memory_space<vmem>>, vector<1x16x128xbf16>
    %29 = vector.shape_cast %28 : vector<1x16x128xbf16> to vector<16x128xbf16>
    %30 = vector.shape_cast %27 : vector<16x128xbf16> to vector<1x16x128xbf16>
    tpu.vector_store %arg6[%c0_15, %c0_16, %c0_17], %30 {strides = array<i32>} : memref<1x16x128xbf16, #tpu.memory_space<vmem>>, vector<1x16x128xbf16>,
    %c0_i32 = arith.constant 0 : i32
    %31 = arith.cmpi eq, %arg1, %c0_i32 : i32
    %32 = arith.extui %31 : i1 to i32
    %c0_i32_18 = arith.constant 0 : i32
    %33 = arith.cmpi ne, %32, %c0_i32_18 : i32
    scf.if %33 {
      %cst_26 = arith.constant 0.000000e+00 : f32
      %41 = vector.broadcast %cst_26 : f32 to vector<1x1x128xf32>
      %c0_27 = arith.constant 0 : index
      %c0_28 = arith.constant 0 : index
      %c0_29 = arith.constant 0 : index
      %42 = vector.load %arg7[%c0_27, %c0_28, %c0_29] : memref<1x1x128xf32, #tpu.memory_space<vmem>>, vector<1x1x128xf32>
      tpu.vector_store %arg7[%c0_27, %c0_28, %c0_29], %41 {strides = array<i32>} : memref<1x1x128xf32, #tpu.memory_space<vmem>>, vector<1x1x128xf32>,
    } else {
    }
    %c0_19 = arith.constant 0 : index
    %c0_20 = arith.constant 0 : index
    %c0_21 = arith.constant 0 : index
    %34 = vector.load %arg7[%c0_19, %c0_20, %c0_21] : memref<1x1x128xf32, #tpu.memory_space<vmem>>, vector<1x1x128xf32>
    %35 = math.absf %26 : vector<16x128xf32>
    %cst_22 = arith.constant dense<0.000000e+00> : vector<128xf32>
    %36 = vector.multi_reduction <add>, %35, %cst_22 [0] : vector<16x128xf32> to vector<128xf32>
    %37 = vector.shape_cast %36 : vector<128xf32> to vector<1x128xf32>
    %38 = vector.shape_cast %37 : vector<1x128xf32> to vector<1x1x128xf32>
    %39 = arith.addf %34, %38 : vector<1x1x128xf32>
    %c0_23 = arith.constant 0 : index
    %c0_24 = arith.constant 0 : index
    %c0_25 = arith.constant 0 : index
    %40 = vector.load %arg7[%c0_23, %c0_24, %c0_25] : memref<1x1x128xf32, #tpu.memory_space<vmem>>, vector<1x1x128xf32>
    tpu.vector_store %arg7[%c0_23, %c0_24, %c0_25], %39 {strides = array<i32>} : memref<1x1x128xf32, #tpu.memory_space<vmem>>, vector<1x1x128xf32>,
    return
  }
  func.func @transform_0(%arg0: i32, %arg1: i32) -> (i32, i32, i32) {
    %c0_i32 = arith.constant 0 : i32
    %c0_i32_0 = arith.constant 0 : i32
    %c0_i32_1 = arith.constant 0 : i32
    return %arg0, %c0_i32, %c0_i32_0 : i32, i32, i32
  }
  func.func @transform_1(%arg0: i32, %arg1: i32) -> (i32, i32, i32) {
    %c0_i32 = arith.constant 0 : i32
    %c0_i32_0 = arith.constant 0 : i32
    %c0_i32_1 = arith.constant 0 : i32
    %c0_i32_2 = arith.constant 0 : i32
    return %c0_i32, %c0_i32_0, %c0_i32_1 : i32, i32, i32
  }
  func.func @transform_2(%arg0: i32, %arg1: i32) -> (i32, i32) {
    %c0_i32 = arith.constant 0 : i32
    %c0_i32_0 = arith.constant 0 : i32
    %c0_i32_1 = arith.constant 0 : i32
    return %c0_i32, %c0_i32_0 : i32, i32
  }
  func.func @transform_3(%arg0: i32, %arg1: i32) -> (i32, i32) {
    %c0_i32 = arith.constant 0 : i32
    %c0_i32_0 = arith.constant 0 : i32
    %c0_i32_1 = arith.constant 0 : i32
    return %c0_i32, %c0_i32_0 : i32, i32
  }
  func.func @transform_4(%arg0: i32, %arg1: i32) -> (i32, i32, i32) {
    %c0_i32 = arith.constant 0 : i32
    %c0_i32_0 = arith.constant 0 : i32
    return %arg0, %arg1, %c0_i32 : i32, i32, i32
  }
  func.func @transform_5(%arg0: i32, %arg1: i32) -> (i32, i32, i32) {
    %c0_i32 = arith.constant 0 : i32
    %c0_i32_0 = arith.constant 0 : i32
    %c0_i32_1 = arith.constant 0 : i32
    return %arg0, %c0_i32, %c0_i32_0 : i32, i32, i32
  }
}

module attributes {stable_mosaic.version = 11 : i64} {
  func.func @_shrink_add_relu_kernel(%arg0: i32, %arg1: i32, %arg2: memref<1x16x128xbf16, #tpu.memory_space<vmem>>, %arg3: memref<1x16x128xbf16, #tpu.memory_space<vmem>>, %arg4: memref<1x1x128xf32, #tpu.memory_space<vmem>>, %arg5: memref<1x16x128xbf16, #tpu.memory_space<vmem>>) attributes {dimension_semantics = [#tpu.dimension_semantics<parallel>, #tpu.dimension_semantics<parallel>], iteration_bounds = array<i64: 2, 1>, scalar_prefetch = 0 : i64, scratch_operands = 0 : i64, tpu.core_type = #tpu.core_type<tc>, window_params = [{transform_indices = @transform_0, window_bounds = array<i64: 1, 16, 128>}, {transform_indices = @transform_1, window_bounds = array<i64: 1, 16, 128>}, {transform_indices = @transform_2, window_bounds = array<i64: 1, 1, 128>}, {transform_indices = @transform_3, window_bounds = array<i64: 1, 16, 128>}]} {
    %c0 = arith.constant 0 : index
    %c0_0 = arith.constant 0 : index
    %c0_1 = arith.constant 0 : index
    %0 = vector.load %arg2[%c0, %c0_0, %c0_1] : memref<1x16x128xbf16, #tpu.memory_space<vmem>>, vector<1x16x128xbf16>
    %1 = vector.shape_cast %0 : vector<1x16x128xbf16> to vector<16x128xbf16>
    %2 = arith.extf %1 : vector<16x128xbf16> to vector<16x128xf32>
    %c0_2 = arith.constant 0 : index
    %c0_3 = arith.constant 0 : index
    %c0_4 = arith.constant 0 : index
    %3 = vector.load %arg3[%c0_2, %c0_3, %c0_4] : memref<1x16x128xbf16, #tpu.memory_space<vmem>>, vector<1x16x128xbf16>
    %4 = vector.shape_cast %3 : vector<1x16x128xbf16> to vector<16x128xbf16>
    %5 = arith.extf %4 : vector<16x128xbf16> to vector<16x128xf32>
    %c0_5 = arith.constant 0 : index
    %c0_6 = arith.constant 0 : index
    %c0_7 = arith.constant 0 : index
    %6 = vector.load %arg4[%c0_5, %c0_6, %c0_7] : memref<1x1x128xf32, #tpu.memory_space<vmem>>, vector<1x1x128xf32>
    %7 = vector.shape_cast %6 : vector<1x1x128xf32> to vector<1x128xf32>
    %cst = arith.constant 0.000000e+00 : f32
    %8 = vector.broadcast %cst : f32 to vector<1x128xf32>
    %9 = arith.subf %8, %7 : vector<1x128xf32>
    %10 = vector.broadcast %9 : vector<1x128xf32> to vector<16x128xf32>
    %11 = arith.maximumf %10, %2 : vector<16x128xf32>
    %12 = vector.broadcast %7 : vector<1x128xf32> to vector<16x128xf32>
    %13 = arith.minimumf %12, %11 : vector<16x128xf32>
    %14 = arith.subf %2, %13 : vector<16x128xf32>
    %15 = arith.addf %14, %5 : vector<16x128xf32>
    %cst_8 = arith.constant 0.000000e+00 : f32
    %16 = vector.broadcast %cst_8 : f32 to vector<16x128xf32>
    %17 = arith.maximumf %15, %16 : vector<16x128xf32>
    %18 = arith.truncf %17 : vector<16x128xf32> to vector<16x128xbf16>
    %c0_9 = arith.constant 0 : index
    %c0_10 = arith.constant 0 : index
    %c0_11 = arith.constant 0 : index
    %19 = vector.load %arg5[%c0_9, %c0_10, %c0_11] : memref<1x16x128xbf16, #tpu.memory_space<vmem>>, vector<1x16x128xbf16>
    %20 = vector.shape_cast %19 : vector<1x16x128xbf16> to vector<16x128xbf16>
    %21 = vector.shape_cast %18 : vector<16x128xbf16> to vector<1x16x128xbf16>
    tpu.vector_store %arg5[%c0_9, %c0_10, %c0_11], %21 {strides = array<i32>} : memref<1x16x128xbf16, #tpu.memory_space<vmem>>, vector<1x16x128xbf16>,
    return
  }
  func.func @transform_0(%arg0: i32, %arg1: i32) -> (i32, i32, i32) {
    %c0_i32 = arith.constant 0 : i32
    %c0_i32_0 = arith.constant 0 : i32
    return %arg0, %arg1, %c0_i32 : i32, i32, i32
  }
  func.func @transform_1(%arg0: i32, %arg1: i32) -> (i32, i32, i32) {
    %c0_i32 = arith.constant 0 : i32
    %c0_i32_0 = arith.constant 0 : i32
    return %arg0, %arg1, %c0_i32 : i32, i32, i32
  }
  func.func @transform_2(%arg0: i32, %arg1: i32) -> (i32, i32, i32) {
    %c0_i32 = arith.constant 0 : i32
    %c0_i32_0 = arith.constant 0 : i32
    %c0_i32_1 = arith.constant 0 : i32
    return %arg0, %c0_i32, %c0_i32_0 : i32, i32, i32
  }
  func.func @transform_3(%arg0: i32, %arg1: i32) -> (i32, i32, i32) {
    %c0_i32 = arith.constant 0 : i32
    %c0_i32_0 = arith.constant 0 : i32
    return %arg0, %arg1, %c0_i32 : i32, i32, i32
  }
}

module attributes {stable_mosaic.version = 11 : i64} {
  func.func @_conv_bn_act_kernel(%arg0: i32, %arg1: i32, %arg2: memref<1x9x128xbf16, #tpu.memory_space<vmem>>, %arg3: memref<1x9x128xbf16, #tpu.memory_space<vmem>>, %arg4: memref<3x128x128xbf16, #tpu.memory_space<vmem>>, %arg5: memref<1x128xf32, #tpu.memory_space<vmem>>, %arg6: memref<1x128xf32, #tpu.memory_space<vmem>>, %arg7: memref<1x8x128xbf16, #tpu.memory_space<vmem>>) attributes {dimension_semantics = [#tpu.dimension_semantics<parallel>, #tpu.dimension_semantics<parallel>], iteration_bounds = array<i64: 2, 1>, scalar_prefetch = 0 : i64, scratch_operands = 0 : i64, tpu.core_type = #tpu.core_type<tc>, window_params = [{transform_indices = @transform_0, window_bounds = array<i64: 1, 9, 128>}, {transform_indices = @transform_1, window_bounds = array<i64: 1, 9, 128>}, {pipeline_mode = #tpu.pipeline_mode<synchronous>, transform_indices = @transform_2, window_bounds = array<i64: 3, 128, 128>}, {pipeline_mode = #tpu.pipeline_mode<synchronous>, transform_indices = @transform_3, window_bounds = array<i64: 1, 128>}, {pipeline_mode = #tpu.pipeline_mode<synchronous>, transform_indices = @transform_4, window_bounds = array<i64: 1, 128>}, {transform_indices = @transform_5, window_bounds = array<i64: 1, 8, 128>}]} {
    %c8_i32 = arith.constant 8 : i32
    %0 = arith.muli %arg1, %c8_i32 : i32
    %1 = tpu.assume_multiple %0, 8 : i32
    %cst = arith.constant 0.000000e+00 : f32
    %2 = vector.broadcast %cst : f32 to vector<8x128xf32>
    %c0 = arith.constant 0 : index
    %3 = arith.index_cast %1 : i32 to index
    %c0_0 = arith.constant 0 : index
    %4 = vector.load %arg2[%c0, %3, %c0_0] : memref<1x9x128xbf16, #tpu.memory_space<vmem>>, vector<1x9x128xbf16>
    %5 = vector.shape_cast %4 : vector<1x9x128xbf16> to vector<9x128xbf16>
    %6 = vector.extract_strided_slice %5 {offsets = [0, 0], sizes = [8, 128], strides = [1, 1]} : vector<9x128xbf16> to vector<8x128xbf16>
    %c0_1 = arith.constant 0 : index
    %c0_2 = arith.constant 0 : index
    %c0_3 = arith.constant 0 : index
    %7 = vector.load %arg4[%c0_1, %c0_2, %c0_3] : memref<3x128x128xbf16, #tpu.memory_space<vmem>>, vector<1x128x128xbf16>
    %8 = vector.shape_cast %7 : vector<1x128x128xbf16> to vector<128x128xbf16>
    %cst_4 = arith.constant dense<0.000000e+00> : vector<8x128xf32>
    %9 = tpu.matmul %6, %8, %cst_4 {dimension_numbers = #tpu.dot_dimension_numbers<[1], [0], [0], [1], [0, 0, 1, 1], [], []>} : vector<8x128xbf16>, vector<128x128xbf16>, vector<8x128xf32> -> vector<8x128xf32>
    %10 = arith.addf %2, %9 : vector<8x128xf32>
    %11 = vector.extract_strided_slice %5 {offsets = [1, 0], sizes = [8, 128], strides = [1, 1]} : vector<9x128xbf16> to vector<8x128xbf16>
    %c2 = arith.constant 2 : index
    %c0_5 = arith.constant 0 : index
    %c0_6 = arith.constant 0 : index
    %12 = vector.load %arg4[%c2, %c0_5, %c0_6] : memref<3x128x128xbf16, #tpu.memory_space<vmem>>, vector<1x128x128xbf16>
    %13 = vector.shape_cast %12 : vector<1x128x128xbf16> to vector<128x128xbf16>
    %cst_7 = arith.constant dense<0.000000e+00> : vector<8x128xf32>
    %14 = tpu.matmul %11, %13, %cst_7 {dimension_numbers = #tpu.dot_dimension_numbers<[1], [0], [0], [1], [0, 0, 1, 1], [], []>} : vector<8x128xbf16>, vector<128x128xbf16>, vector<8x128xf32> -> vector<8x128xf32>
    %15 = arith.addf %10, %14 : vector<8x128xf32>
    %c0_8 = arith.constant 0 : index
    %16 = arith.index_cast %1 : i32 to index
    %c0_9 = arith.constant 0 : index
    %17 = vector.load %arg3[%c0_8, %16, %c0_9] : memref<1x9x128xbf16, #tpu.memory_space<vmem>>, vector<1x8x128xbf16>
    %18 = vector.shape_cast %17 : vector<1x8x128xbf16> to vector<8x128xbf16>
    %c1 = arith.constant 1 : index
    %c0_10 = arith.constant 0 : index
    %c0_11 = arith.constant 0 : index
    %19 = vector.load %arg4[%c1, %c0_10, %c0_11] : memref<3x128x128xbf16, #tpu.memory_space<vmem>>, vector<1x128x128xbf16>
    %20 = vector.shape_cast %19 : vector<1x128x128xbf16> to vector<128x128xbf16>
    %cst_12 = arith.constant dense<0.000000e+00> : vector<8x128xf32>
    %21 = tpu.matmul %18, %20, %cst_12 {dimension_numbers = #tpu.dot_dimension_numbers<[1], [0], [0], [1], [0, 0, 1, 1], [], []>} : vector<8x128xbf16>, vector<128x128xbf16>, vector<8x128xf32> -> vector<8x128xf32>
    %22 = arith.addf %15, %21 : vector<8x128xf32>
    %c0_13 = arith.constant 0 : index
    %c0_14 = arith.constant 0 : index
    %23 = vector.load %arg5[%c0_13, %c0_14] : memref<1x128xf32, #tpu.memory_space<vmem>>, vector<1x128xf32>
    %24 = vector.broadcast %23 : vector<1x128xf32> to vector<8x128xf32>
    %25 = arith.mulf %22, %24 : vector<8x128xf32>
    %c0_15 = arith.constant 0 : index
    %c0_16 = arith.constant 0 : index
    %26 = vector.load %arg6[%c0_15, %c0_16] : memref<1x128xf32, #tpu.memory_space<vmem>>, vector<1x128xf32>
    %27 = vector.broadcast %26 : vector<1x128xf32> to vector<8x128xf32>
    %28 = arith.addf %25, %27 : vector<8x128xf32>
    %cst_17 = arith.constant 0.000000e+00 : f32
    %29 = vector.broadcast %cst_17 : f32 to vector<8x128xf32>
    %30 = arith.maximumf %28, %29 : vector<8x128xf32>
    %31 = arith.truncf %30 : vector<8x128xf32> to vector<8x128xbf16>
    %c0_18 = arith.constant 0 : index
    %c0_19 = arith.constant 0 : index
    %c0_20 = arith.constant 0 : index
    %32 = vector.load %arg7[%c0_18, %c0_19, %c0_20] : memref<1x8x128xbf16, #tpu.memory_space<vmem>>, vector<1x8x128xbf16>
    %33 = vector.shape_cast %32 : vector<1x8x128xbf16> to vector<8x128xbf16>
    %34 = vector.shape_cast %31 : vector<8x128xbf16> to vector<1x8x128xbf16>
    tpu.vector_store %arg7[%c0_18, %c0_19, %c0_20], %34 {strides = array<i32>} : memref<1x8x128xbf16, #tpu.memory_space<vmem>>, vector<1x8x128xbf16>,
    return
  }
  func.func @transform_0(%arg0: i32, %arg1: i32) -> (i32, i32, i32) {
    %c0_i32 = arith.constant 0 : i32
    %c0_i32_0 = arith.constant 0 : i32
    %c0_i32_1 = arith.constant 0 : i32
    return %arg0, %c0_i32, %c0_i32_0 : i32, i32, i32
  }
  func.func @transform_1(%arg0: i32, %arg1: i32) -> (i32, i32, i32) {
    %c0_i32 = arith.constant 0 : i32
    %c0_i32_0 = arith.constant 0 : i32
    %c0_i32_1 = arith.constant 0 : i32
    return %arg0, %c0_i32, %c0_i32_0 : i32, i32, i32
  }
  func.func @transform_2(%arg0: i32, %arg1: i32) -> (i32, i32, i32) {
    %c0_i32 = arith.constant 0 : i32
    %c0_i32_0 = arith.constant 0 : i32
    %c0_i32_1 = arith.constant 0 : i32
    %c0_i32_2 = arith.constant 0 : i32
    return %c0_i32, %c0_i32_0, %c0_i32_1 : i32, i32, i32
  }
  func.func @transform_3(%arg0: i32, %arg1: i32) -> (i32, i32) {
    %c0_i32 = arith.constant 0 : i32
    %c0_i32_0 = arith.constant 0 : i32
    %c0_i32_1 = arith.constant 0 : i32
    return %c0_i32, %c0_i32_0 : i32, i32
  }
  func.func @transform_4(%arg0: i32, %arg1: i32) -> (i32, i32) {
    %c0_i32 = arith.constant 0 : i32
    %c0_i32_0 = arith.constant 0 : i32
    %c0_i32_1 = arith.constant 0 : i32
    return %c0_i32, %c0_i32_0 : i32, i32
  }
  func.func @transform_5(%arg0: i32, %arg1: i32) -> (i32, i32, i32) {
    %c0_i32 = arith.constant 0 : i32
    %c0_i32_0 = arith.constant 0 : i32
    return %arg0, %arg1, %c0_i32 : i32, i32, i32
  }
}

module attributes {stable_mosaic.version = 11 : i64} {
  func.func @_conv_bn_act_kernel(%arg0: i32, %arg1: i32, %arg2: memref<1x8x128xbf16, #tpu.memory_space<vmem>>, %arg3: memref<1x128x128xbf16, #tpu.memory_space<vmem>>, %arg4: memref<1x128xf32, #tpu.memory_space<vmem>>, %arg5: memref<1x128xf32, #tpu.memory_space<vmem>>, %arg6: memref<1x8x128xbf16, #tpu.memory_space<vmem>>) attributes {dimension_semantics = [#tpu.dimension_semantics<parallel>, #tpu.dimension_semantics<parallel>], iteration_bounds = array<i64: 2, 1>, scalar_prefetch = 0 : i64, scratch_operands = 0 : i64, tpu.core_type = #tpu.core_type<tc>, window_params = [{transform_indices = @transform_0, window_bounds = array<i64: 1, 8, 128>}, {pipeline_mode = #tpu.pipeline_mode<synchronous>, transform_indices = @transform_1, window_bounds = array<i64: 1, 128, 128>}, {pipeline_mode = #tpu.pipeline_mode<synchronous>, transform_indices = @transform_2, window_bounds = array<i64: 1, 128>}, {pipeline_mode = #tpu.pipeline_mode<synchronous>, transform_indices = @transform_3, window_bounds = array<i64: 1, 128>}, {transform_indices = @transform_4, window_bounds = array<i64: 1, 8, 128>}]} {
    %c8_i32 = arith.constant 8 : i32
    %0 = arith.muli %arg1, %c8_i32 : i32
    %1 = tpu.assume_multiple %0, 8 : i32
    %cst = arith.constant 0.000000e+00 : f32
    %2 = vector.broadcast %cst : f32 to vector<8x128xf32>
    %c0 = arith.constant 0 : index
    %3 = arith.index_cast %1 : i32 to index
    %c0_0 = arith.constant 0 : index
    %4 = vector.load %arg2[%c0, %3, %c0_0] : memref<1x8x128xbf16, #tpu.memory_space<vmem>>, vector<1x8x128xbf16>
    %5 = vector.shape_cast %4 : vector<1x8x128xbf16> to vector<8x128xbf16>
    %c0_1 = arith.constant 0 : index
    %c0_2 = arith.constant 0 : index
    %c0_3 = arith.constant 0 : index
    %6 = vector.load %arg3[%c0_1, %c0_2, %c0_3] : memref<1x128x128xbf16, #tpu.memory_space<vmem>>, vector<1x128x128xbf16>
    %7 = vector.shape_cast %6 : vector<1x128x128xbf16> to vector<128x128xbf16>
    %cst_4 = arith.constant dense<0.000000e+00> : vector<8x128xf32>
    %8 = tpu.matmul %5, %7, %cst_4 {dimension_numbers = #tpu.dot_dimension_numbers<[1], [0], [0], [1], [0, 0, 1, 1], [], []>} : vector<8x128xbf16>, vector<128x128xbf16>, vector<8x128xf32> -> vector<8x128xf32>
    %9 = arith.addf %2, %8 : vector<8x128xf32>
    %c0_5 = arith.constant 0 : index
    %c0_6 = arith.constant 0 : index
    %10 = vector.load %arg4[%c0_5, %c0_6] : memref<1x128xf32, #tpu.memory_space<vmem>>, vector<1x128xf32>
    %11 = vector.broadcast %10 : vector<1x128xf32> to vector<8x128xf32>
    %12 = arith.mulf %9, %11 : vector<8x128xf32>
    %c0_7 = arith.constant 0 : index
    %c0_8 = arith.constant 0 : index
    %13 = vector.load %arg5[%c0_7, %c0_8] : memref<1x128xf32, #tpu.memory_space<vmem>>, vector<1x128xf32>
    %14 = vector.broadcast %13 : vector<1x128xf32> to vector<8x128xf32>
    %15 = arith.addf %12, %14 : vector<8x128xf32>
    %16 = arith.truncf %15 : vector<8x128xf32> to vector<8x128xbf16>
    %c0_9 = arith.constant 0 : index
    %c0_10 = arith.constant 0 : index
    %c0_11 = arith.constant 0 : index
    %17 = vector.load %arg6[%c0_9, %c0_10, %c0_11] : memref<1x8x128xbf16, #tpu.memory_space<vmem>>, vector<1x8x128xbf16>
    %18 = vector.shape_cast %17 : vector<1x8x128xbf16> to vector<8x128xbf16>
    %19 = vector.shape_cast %16 : vector<8x128xbf16> to vector<1x8x128xbf16>
    tpu.vector_store %arg6[%c0_9, %c0_10, %c0_11], %19 {strides = array<i32>} : memref<1x8x128xbf16, #tpu.memory_space<vmem>>, vector<1x8x128xbf16>,
    return
  }
  func.func @transform_0(%arg0: i32, %arg1: i32) -> (i32, i32, i32) {
    %c0_i32 = arith.constant 0 : i32
    %c0_i32_0 = arith.constant 0 : i32
    %c0_i32_1 = arith.constant 0 : i32
    return %arg0, %c0_i32, %c0_i32_0 : i32, i32, i32
  }
  func.func @transform_1(%arg0: i32, %arg1: i32) -> (i32, i32, i32) {
    %c0_i32 = arith.constant 0 : i32
    %c0_i32_0 = arith.constant 0 : i32
    %c0_i32_1 = arith.constant 0 : i32
    %c0_i32_2 = arith.constant 0 : i32
    return %c0_i32, %c0_i32_0, %c0_i32_1 : i32, i32, i32
  }
  func.func @transform_2(%arg0: i32, %arg1: i32) -> (i32, i32) {
    %c0_i32 = arith.constant 0 : i32
    %c0_i32_0 = arith.constant 0 : i32
    %c0_i32_1 = arith.constant 0 : i32
    return %c0_i32, %c0_i32_0 : i32, i32
  }
  func.func @transform_3(%arg0: i32, %arg1: i32) -> (i32, i32) {
    %c0_i32 = arith.constant 0 : i32
    %c0_i32_0 = arith.constant 0 : i32
    %c0_i32_1 = arith.constant 0 : i32
    return %c0_i32, %c0_i32_0 : i32, i32
  }
  func.func @transform_4(%arg0: i32, %arg1: i32) -> (i32, i32, i32) {
    %c0_i32 = arith.constant 0 : i32
    %c0_i32_0 = arith.constant 0 : i32
    return %arg0, %arg1, %c0_i32 : i32, i32, i32
  }
}

module attributes {stable_mosaic.version = 11 : i64} {
  func.func @_conv_bn_act_kernel(%arg0: i32, %arg1: i32, %arg2: memref<1x10x128xbf16, #tpu.memory_space<vmem>>, %arg3: memref<3x128x128xbf16, #tpu.memory_space<vmem>>, %arg4: memref<1x128xf32, #tpu.memory_space<vmem>>, %arg5: memref<1x128xf32, #tpu.memory_space<vmem>>, %arg6: memref<1x8x128xbf16, #tpu.memory_space<vmem>>, %arg7: memref<1x1x128xf32, #tpu.memory_space<vmem>>) attributes {dimension_semantics = [#tpu.dimension_semantics<parallel>, #tpu.dimension_semantics<arbitrary>], iteration_bounds = array<i64: 2, 1>, scalar_prefetch = 0 : i64, scratch_operands = 0 : i64, tpu.core_type = #tpu.core_type<tc>, window_params = [{transform_indices = @transform_0, window_bounds = array<i64: 1, 10, 128>}, {pipeline_mode = #tpu.pipeline_mode<synchronous>, transform_indices = @transform_1, window_bounds = array<i64: 3, 128, 128>}, {pipeline_mode = #tpu.pipeline_mode<synchronous>, transform_indices = @transform_2, window_bounds = array<i64: 1, 128>}, {pipeline_mode = #tpu.pipeline_mode<synchronous>, transform_indices = @transform_3, window_bounds = array<i64: 1, 128>}, {transform_indices = @transform_4, window_bounds = array<i64: 1, 8, 128>}, {transform_indices = @transform_5, window_bounds = array<i64: 1, 1, 128>}]} {
    %c8_i32 = arith.constant 8 : i32
    %0 = arith.muli %arg1, %c8_i32 : i32
    %1 = tpu.assume_multiple %0, 8 : i32
    %cst = arith.constant 0.000000e+00 : f32
    %2 = vector.broadcast %cst : f32 to vector<8x128xf32>
    %c0 = arith.constant 0 : index
    %3 = arith.index_cast %1 : i32 to index
    %c0_0 = arith.constant 0 : index
    %4 = vector.load %arg2[%c0, %3, %c0_0] : memref<1x10x128xbf16, #tpu.memory_space<vmem>>, vector<1x10x128xbf16>
    %5 = vector.shape_cast %4 : vector<1x10x128xbf16> to vector<10x128xbf16>
    %6 = vector.extract_strided_slice %5 {offsets = [0, 0], sizes = [8, 128], strides = [1, 1]} : vector<10x128xbf16> to vector<8x128xbf16>
    %c0_1 = arith.constant 0 : index
    %c0_2 = arith.constant 0 : index
    %c0_3 = arith.constant 0 : index
    %7 = vector.load %arg3[%c0_1, %c0_2, %c0_3] : memref<3x128x128xbf16, #tpu.memory_space<vmem>>, vector<1x128x128xbf16>
    %8 = vector.shape_cast %7 : vector<1x128x128xbf16> to vector<128x128xbf16>
    %cst_4 = arith.constant dense<0.000000e+00> : vector<8x128xf32>
    %9 = tpu.matmul %6, %8, %cst_4 {dimension_numbers = #tpu.dot_dimension_numbers<[1], [0], [0], [1], [0, 0, 1, 1], [], []>} : vector<8x128xbf16>, vector<128x128xbf16>, vector<8x128xf32> -> vector<8x128xf32>
    %10 = arith.addf %2, %9 : vector<8x128xf32>
    %11 = vector.extract_strided_slice %5 {offsets = [1, 0], sizes = [8, 128], strides = [1, 1]} : vector<10x128xbf16> to vector<8x128xbf16>
    %c1 = arith.constant 1 : index
    %c0_5 = arith.constant 0 : index
    %c0_6 = arith.constant 0 : index
    %12 = vector.load %arg3[%c1, %c0_5, %c0_6] : memref<3x128x128xbf16, #tpu.memory_space<vmem>>, vector<1x128x128xbf16>
    %13 = vector.shape_cast %12 : vector<1x128x128xbf16> to vector<128x128xbf16>
    %cst_7 = arith.constant dense<0.000000e+00> : vector<8x128xf32>
    %14 = tpu.matmul %11, %13, %cst_7 {dimension_numbers = #tpu.dot_dimension_numbers<[1], [0], [0], [1], [0, 0, 1, 1], [], []>} : vector<8x128xbf16>, vector<128x128xbf16>, vector<8x128xf32> -> vector<8x128xf32>
    %15 = arith.addf %10, %14 : vector<8x128xf32>
    %16 = vector.extract_strided_slice %5 {offsets = [2, 0], sizes = [8, 128], strides = [1, 1]} : vector<10x128xbf16> to vector<8x128xbf16>
    %c2 = arith.constant 2 : index
    %c0_8 = arith.constant 0 : index
    %c0_9 = arith.constant 0 : index
    %17 = vector.load %arg3[%c2, %c0_8, %c0_9] : memref<3x128x128xbf16, #tpu.memory_space<vmem>>, vector<1x128x128xbf16>
    %18 = vector.shape_cast %17 : vector<1x128x128xbf16> to vector<128x128xbf16>
    %cst_10 = arith.constant dense<0.000000e+00> : vector<8x128xf32>
    %19 = tpu.matmul %16, %18, %cst_10 {dimension_numbers = #tpu.dot_dimension_numbers<[1], [0], [0], [1], [0, 0, 1, 1], [], []>} : vector<8x128xbf16>, vector<128x128xbf16>, vector<8x128xf32> -> vector<8x128xf32>
    %20 = arith.addf %15, %19 : vector<8x128xf32>
    %c0_11 = arith.constant 0 : index
    %c0_12 = arith.constant 0 : index
    %21 = vector.load %arg4[%c0_11, %c0_12] : memref<1x128xf32, #tpu.memory_space<vmem>>, vector<1x128xf32>
    %22 = vector.broadcast %21 : vector<1x128xf32> to vector<8x128xf32>
    %23 = arith.mulf %20, %22 : vector<8x128xf32>
    %c0_13 = arith.constant 0 : index
    %c0_14 = arith.constant 0 : index
    %24 = vector.load %arg5[%c0_13, %c0_14] : memref<1x128xf32, #tpu.memory_space<vmem>>, vector<1x128xf32>
    %25 = vector.broadcast %24 : vector<1x128xf32> to vector<8x128xf32>
    %26 = arith.addf %23, %25 : vector<8x128xf32>
    %27 = arith.truncf %26 : vector<8x128xf32> to vector<8x128xbf16>
    %c0_15 = arith.constant 0 : index
    %c0_16 = arith.constant 0 : index
    %c0_17 = arith.constant 0 : index
    %28 = vector.load %arg6[%c0_15, %c0_16, %c0_17] : memref<1x8x128xbf16, #tpu.memory_space<vmem>>, vector<1x8x128xbf16>
    %29 = vector.shape_cast %28 : vector<1x8x128xbf16> to vector<8x128xbf16>
    %30 = vector.shape_cast %27 : vector<8x128xbf16> to vector<1x8x128xbf16>
    tpu.vector_store %arg6[%c0_15, %c0_16, %c0_17], %30 {strides = array<i32>} : memref<1x8x128xbf16, #tpu.memory_space<vmem>>, vector<1x8x128xbf16>,
    %c0_i32 = arith.constant 0 : i32
    %31 = arith.cmpi eq, %arg1, %c0_i32 : i32
    %32 = arith.extui %31 : i1 to i32
    %c0_i32_18 = arith.constant 0 : i32
    %33 = arith.cmpi ne, %32, %c0_i32_18 : i32
    scf.if %33 {
      %cst_26 = arith.constant 0.000000e+00 : f32
      %41 = vector.broadcast %cst_26 : f32 to vector<1x1x128xf32>
      %c0_27 = arith.constant 0 : index
      %c0_28 = arith.constant 0 : index
      %c0_29 = arith.constant 0 : index
      %42 = vector.load %arg7[%c0_27, %c0_28, %c0_29] : memref<1x1x128xf32, #tpu.memory_space<vmem>>, vector<1x1x128xf32>
      tpu.vector_store %arg7[%c0_27, %c0_28, %c0_29], %41 {strides = array<i32>} : memref<1x1x128xf32, #tpu.memory_space<vmem>>, vector<1x1x128xf32>,
    } else {
    }
    %c0_19 = arith.constant 0 : index
    %c0_20 = arith.constant 0 : index
    %c0_21 = arith.constant 0 : index
    %34 = vector.load %arg7[%c0_19, %c0_20, %c0_21] : memref<1x1x128xf32, #tpu.memory_space<vmem>>, vector<1x1x128xf32>
    %35 = math.absf %26 : vector<8x128xf32>
    %cst_22 = arith.constant dense<0.000000e+00> : vector<128xf32>
    %36 = vector.multi_reduction <add>, %35, %cst_22 [0] : vector<8x128xf32> to vector<128xf32>
    %37 = vector.shape_cast %36 : vector<128xf32> to vector<1x128xf32>
    %38 = vector.shape_cast %37 : vector<1x128xf32> to vector<1x1x128xf32>
    %39 = arith.addf %34, %38 : vector<1x1x128xf32>
    %c0_23 = arith.constant 0 : index
    %c0_24 = arith.constant 0 : index
    %c0_25 = arith.constant 0 : index
    %40 = vector.load %arg7[%c0_23, %c0_24, %c0_25] : memref<1x1x128xf32, #tpu.memory_space<vmem>>, vector<1x1x128xf32>
    tpu.vector_store %arg7[%c0_23, %c0_24, %c0_25], %39 {strides = array<i32>} : memref<1x1x128xf32, #tpu.memory_space<vmem>>, vector<1x1x128xf32>,
    return
  }
  func.func @transform_0(%arg0: i32, %arg1: i32) -> (i32, i32, i32) {
    %c0_i32 = arith.constant 0 : i32
    %c0_i32_0 = arith.constant 0 : i32
    %c0_i32_1 = arith.constant 0 : i32
    return %arg0, %c0_i32, %c0_i32_0 : i32, i32, i32
  }
  func.func @transform_1(%arg0: i32, %arg1: i32) -> (i32, i32, i32) {
    %c0_i32 = arith.constant 0 : i32
    %c0_i32_0 = arith.constant 0 : i32
    %c0_i32_1 = arith.constant 0 : i32
    %c0_i32_2 = arith.constant 0 : i32
    return %c0_i32, %c0_i32_0, %c0_i32_1 : i32, i32, i32
  }
  func.func @transform_2(%arg0: i32, %arg1: i32) -> (i32, i32) {
    %c0_i32 = arith.constant 0 : i32
    %c0_i32_0 = arith.constant 0 : i32
    %c0_i32_1 = arith.constant 0 : i32
    return %c0_i32, %c0_i32_0 : i32, i32
  }
  func.func @transform_3(%arg0: i32, %arg1: i32) -> (i32, i32) {
    %c0_i32 = arith.constant 0 : i32
    %c0_i32_0 = arith.constant 0 : i32
    %c0_i32_1 = arith.constant 0 : i32
    return %c0_i32, %c0_i32_0 : i32, i32
  }
  func.func @transform_4(%arg0: i32, %arg1: i32) -> (i32, i32, i32) {
    %c0_i32 = arith.constant 0 : i32
    %c0_i32_0 = arith.constant 0 : i32
    return %arg0, %arg1, %c0_i32 : i32, i32, i32
  }
  func.func @transform_5(%arg0: i32, %arg1: i32) -> (i32, i32, i32) {
    %c0_i32 = arith.constant 0 : i32
    %c0_i32_0 = arith.constant 0 : i32
    %c0_i32_1 = arith.constant 0 : i32
    return %arg0, %c0_i32, %c0_i32_0 : i32, i32, i32
  }
}

module attributes {stable_mosaic.version = 11 : i64} {
  func.func @_shrink_add_relu_kernel(%arg0: i32, %arg1: i32, %arg2: memref<1x8x128xbf16, #tpu.memory_space<vmem>>, %arg3: memref<1x8x128xbf16, #tpu.memory_space<vmem>>, %arg4: memref<1x1x128xf32, #tpu.memory_space<vmem>>, %arg5: memref<1x8x128xbf16, #tpu.memory_space<vmem>>, %arg6: memref<1x1x128xf32, #tpu.memory_space<vmem>>) attributes {dimension_semantics = [#tpu.dimension_semantics<parallel>, #tpu.dimension_semantics<arbitrary>], iteration_bounds = array<i64: 2, 1>, scalar_prefetch = 0 : i64, scratch_operands = 0 : i64, tpu.core_type = #tpu.core_type<tc>, window_params = [{transform_indices = @transform_0, window_bounds = array<i64: 1, 8, 128>}, {transform_indices = @transform_1, window_bounds = array<i64: 1, 8, 128>}, {transform_indices = @transform_2, window_bounds = array<i64: 1, 1, 128>}, {transform_indices = @transform_3, window_bounds = array<i64: 1, 8, 128>}, {transform_indices = @transform_4, window_bounds = array<i64: 1, 1, 128>}]} {
    %c0 = arith.constant 0 : index
    %c0_0 = arith.constant 0 : index
    %c0_1 = arith.constant 0 : index
    %0 = vector.load %arg2[%c0, %c0_0, %c0_1] : memref<1x8x128xbf16, #tpu.memory_space<vmem>>, vector<1x8x128xbf16>
    %1 = vector.shape_cast %0 : vector<1x8x128xbf16> to vector<8x128xbf16>
    %2 = arith.extf %1 : vector<8x128xbf16> to vector<8x128xf32>
    %c0_2 = arith.constant 0 : index
    %c0_3 = arith.constant 0 : index
    %c0_4 = arith.constant 0 : index
    %3 = vector.load %arg3[%c0_2, %c0_3, %c0_4] : memref<1x8x128xbf16, #tpu.memory_space<vmem>>, vector<1x8x128xbf16>
    %4 = vector.shape_cast %3 : vector<1x8x128xbf16> to vector<8x128xbf16>
    %5 = arith.extf %4 : vector<8x128xbf16> to vector<8x128xf32>
    %c0_5 = arith.constant 0 : index
    %c0_6 = arith.constant 0 : index
    %c0_7 = arith.constant 0 : index
    %6 = vector.load %arg4[%c0_5, %c0_6, %c0_7] : memref<1x1x128xf32, #tpu.memory_space<vmem>>, vector<1x1x128xf32>
    %7 = vector.shape_cast %6 : vector<1x1x128xf32> to vector<1x128xf32>
    %cst = arith.constant 0.000000e+00 : f32
    %8 = vector.broadcast %cst : f32 to vector<1x128xf32>
    %9 = arith.subf %8, %7 : vector<1x128xf32>
    %10 = vector.broadcast %9 : vector<1x128xf32> to vector<8x128xf32>
    %11 = arith.maximumf %10, %2 : vector<8x128xf32>
    %12 = vector.broadcast %7 : vector<1x128xf32> to vector<8x128xf32>
    %13 = arith.minimumf %12, %11 : vector<8x128xf32>
    %14 = arith.subf %2, %13 : vector<8x128xf32>
    %15 = arith.addf %14, %5 : vector<8x128xf32>
    %cst_8 = arith.constant 0.000000e+00 : f32
    %16 = vector.broadcast %cst_8 : f32 to vector<8x128xf32>
    %17 = arith.maximumf %15, %16 : vector<8x128xf32>
    %18 = arith.truncf %17 : vector<8x128xf32> to vector<8x128xbf16>
    %c0_9 = arith.constant 0 : index
    %c0_10 = arith.constant 0 : index
    %c0_11 = arith.constant 0 : index
    %19 = vector.load %arg5[%c0_9, %c0_10, %c0_11] : memref<1x8x128xbf16, #tpu.memory_space<vmem>>, vector<1x8x128xbf16>
    %20 = vector.shape_cast %19 : vector<1x8x128xbf16> to vector<8x128xbf16>
    %21 = vector.shape_cast %18 : vector<8x128xbf16> to vector<1x8x128xbf16>
    tpu.vector_store %arg5[%c0_9, %c0_10, %c0_11], %21 {strides = array<i32>} : memref<1x8x128xbf16, #tpu.memory_space<vmem>>, vector<1x8x128xbf16>,
    %c0_i32 = arith.constant 0 : i32
    %22 = arith.cmpi eq, %arg1, %c0_i32 : i32
    %23 = arith.extui %22 : i1 to i32
    %c0_i32_12 = arith.constant 0 : i32
    %24 = arith.cmpi ne, %23, %c0_i32_12 : i32
    scf.if %24 {
      %cst_20 = arith.constant 0.000000e+00 : f32
      %31 = vector.broadcast %cst_20 : f32 to vector<1x1x128xf32>
      %c0_21 = arith.constant 0 : index
      %c0_22 = arith.constant 0 : index
      %c0_23 = arith.constant 0 : index
      %32 = vector.load %arg6[%c0_21, %c0_22, %c0_23] : memref<1x1x128xf32, #tpu.memory_space<vmem>>, vector<1x1x128xf32>
      tpu.vector_store %arg6[%c0_21, %c0_22, %c0_23], %31 {strides = array<i32>} : memref<1x1x128xf32, #tpu.memory_space<vmem>>, vector<1x1x128xf32>,
    } else {
    }
    %c0_13 = arith.constant 0 : index
    %c0_14 = arith.constant 0 : index
    %c0_15 = arith.constant 0 : index
    %25 = vector.load %arg6[%c0_13, %c0_14, %c0_15] : memref<1x1x128xf32, #tpu.memory_space<vmem>>, vector<1x1x128xf32>
    %cst_16 = arith.constant dense<0.000000e+00> : vector<128xf32>
    %26 = vector.multi_reduction <add>, %17, %cst_16 [0] : vector<8x128xf32> to vector<128xf32>
    %27 = vector.shape_cast %26 : vector<128xf32> to vector<1x128xf32>
    %28 = vector.shape_cast %27 : vector<1x128xf32> to vector<1x1x128xf32>
    %29 = arith.addf %25, %28 : vector<1x1x128xf32>
    %c0_17 = arith.constant 0 : index
    %c0_18 = arith.constant 0 : index
    %c0_19 = arith.constant 0 : index
    %30 = vector.load %arg6[%c0_17, %c0_18, %c0_19] : memref<1x1x128xf32, #tpu.memory_space<vmem>>, vector<1x1x128xf32>
    tpu.vector_store %arg6[%c0_17, %c0_18, %c0_19], %29 {strides = array<i32>} : memref<1x1x128xf32, #tpu.memory_space<vmem>>, vector<1x1x128xf32>,
    return
  }
  func.func @transform_0(%arg0: i32, %arg1: i32) -> (i32, i32, i32) {
    %c0_i32 = arith.constant 0 : i32
    %c0_i32_0 = arith.constant 0 : i32
    return %arg0, %arg1, %c0_i32 : i32, i32, i32
  }
  func.func @transform_1(%arg0: i32, %arg1: i32) -> (i32, i32, i32) {
    %c0_i32 = arith.constant 0 : i32
    %c0_i32_0 = arith.constant 0 : i32
    return %arg0, %arg1, %c0_i32 : i32, i32, i32
  }
  func.func @transform_2(%arg0: i32, %arg1: i32) -> (i32, i32, i32) {
    %c0_i32 = arith.constant 0 : i32
    %c0_i32_0 = arith.constant 0 : i32
    %c0_i32_1 = arith.constant 0 : i32
    return %arg0, %c0_i32, %c0_i32_0 : i32, i32, i32
  }
  func.func @transform_3(%arg0: i32, %arg1: i32) -> (i32, i32, i32) {
    %c0_i32 = arith.constant 0 : i32
    %c0_i32_0 = arith.constant 0 : i32
    return %arg0, %arg1, %c0_i32 : i32, i32, i32
  }
  func.func @transform_4(%arg0: i32, %arg1: i32) -> (i32, i32, i32) {
    %c0_i32 = arith.constant 0 : i32
    %c0_i32_0 = arith.constant 0 : i32
    %c0_i32_1 = arith.constant 0 : i32
    return %arg0, %c0_i32, %c0_i32_0 : i32, i32, i32
  }
}

</mosaic_0001>

<bundles_post_ra>
// kernel: sub.1
= control target key start
LH: loop header
LB: loop body
LE: loop exit
PB: predicated region body
PF: predicated region fallthrough
CT: control target
= control target key end

     0   :  { %s20_s0 = inlined_call_operand.<no memory space> [shape: f32[], index: 0, kind: input, shape index: {}]   ;;  %s21_s1 = inlined_call_operand.vmem [shape: f32[32], index: 1, kind: output, shape index: {}]  }
   0x1   :  { %v2_v0 = vstv %s20_s0 }
   0x2   :  { %3 = vst [vmem:[%s21_s1] sm:$0x1] %v2_v0 }

// kernel: _lambda_.12
= control target key start
LH: loop header
LB: loop body
LE: loop exit
PB: predicated region body
PF: predicated region fallthrough
CT: control target
= control target key end

     0   :  { %s599_s15 = smov 0   ;;  %s601_s16 = smov 0   ;;  %s669_s0 = inlined_call_operand.vmem [shape: bf16[2,16,128], index: 0, kind: input, shape index: {}]   ;;  %s670_s1 = inlined_call_operand.vmem [shape: bf16[1,128,128], index: 1, kind: input, shape index: {}]   ;;  %s671_s2 = inlined_call_operand.vmem [shape: f32[1,128], index: 2, kind: input, shape index: {}]   ;;  %s672_s3 = inlined_call_operand.vmem [shape: f32[1,128], index: 3, kind: input, shape index: {}]   ;;  %s673_s4 = inlined_call_operand.vmem [shape: bf16[2,16,128], index: 4, kind: output, shape index: {}]  }
   0x1   :  { %s603_s17 = smov 0  }
   0x2 LB: > { %s26_s18 = sadd.s32 1, %s566_s16  ;;  %p455_p0 = scmp.ge.s32.totalorder %s570_s17, 1  ;;  %s570_s17 = sphi %s603_s17, %s14_s17   ;;  %s566_s16 = sphi %s601_s16, %s675_s16   ;;  %s562_s15 = sphi %s599_s15, %s674_s15  }
   0x3   : > { %p28_p1 = scmp.ge.s32.totalorder %s26_s18, 2  ;;  %p176_p2 = scmp.lt.s32.totalorder %s570_s17, 3 }
   0x5   : > { %s677_s18 = smov (%p28_p1, %s26_s18), 0  ;;  %p177_p3 = pnand %p455_p0, %p176_p2 }
   0x6   : > { %v539_v0 = vld [vmem:[%s670_s1] sm:$0xff] (!%p177_p3)   ;;  %v572_v1 = vmov (!%p177_p3), 0.0   ;;  %v540_v2 = vld [vmem:[%s670_s1 + $0x8] sm:$0xff] (!%p177_p3)   ;;  %vm573_vm0 = vmmov (!%p177_p3), 0   ;;  %p206_p4 = scmp.lt.s32.totalorder (!%p177_p3), %s562_s15, 1  ;;  %v541_v3 = vld [vmem:[%s670_s1 + $0x10] sm:$0xff] (!%p177_p3)  }
   0x7   : > { %180 = sbr.rel (%p177_p3) target bundleno = 260 (0x104), region = 36  ;;  %493 = vmatprep.subr.bf16.mxu0 (!%p177_p3), %v572_v1  ;;  %509 = vmatprep.mubr.msk.bf16.mxu0 (!%p177_p3), %vm573_vm0, %v572_v1  ;;  %v542_v4 = vld [vmem:[%s670_s1 + $0x18] sm:$0xff] (!%p177_p3)   ;;  %v543_v5 = vld [vmem:[%s670_s1 + $0x20] sm:$0xff] (!%p177_p3)   ;;  %v544_v6 = vld [vmem:[%s670_s1 + $0x28] sm:$0xff] (!%p177_p3)  }
   0x8   : > { %494 = vmatpush3.bf16.msra.mxu0 (!%p177_p3), %v539_v0  ;;  %v545_v7 = vld [vmem:[%s670_s1 + $0x30] sm:$0xff] (!%p177_p3)   ;;  %v546_v8 = vld [vmem:[%s670_s1 + $0x38] sm:$0xff] (!%p177_p3)   ;;  %v469_v10 = vld [vmem:[%s671_s2] ss:$0 sm:$0xff] (!%p177_p3) }
   0x9   : > { %495 = vmatprep.subr.bf16.mxu0 (!%p177_p3), %v572_v1  ;;  %v470_v14 = vld [vmem:[%s672_s3] ss:$0 sm:$0xff] (!%p177_p3) }
   0xc   : > { %496 = vmatpush3.bf16.msra.mxu0 (!%p177_p3), %v540_v2 }
   0xd   : > { %497 = vmatprep.subr.bf16.mxu0 (!%p177_p3), %v572_v1 }
   0xe   : > { %s679_s15 = smov (!%p206_p4, %s562_s15), 1 }
   0xf   : > { %s475_s25 = sshll.u32 %s679_s15, 3 }
  0x10   : > { %s210_s28 = scalar_lea.vmem %s669_s0, %s475_s25  ;;  %498 = vmatpush3.bf16.msra.mxu0 %v541_v3  ;;  %s219_s23 = scalar_lea.vmem %s673_s4, %s475_s25 }
  0x11   : > { %499 = vmatprep.subr.bf16.mxu0 %v572_v1  ;;  %v547_v9 = vld [vmem:[%s210_s28] sm:$0xff]  }
  0x14   : > { %500 = vmatpush3.bf16.msra.mxu0 %v542_v4 }
  0x15   : > { %501 = vmatprep.subr.bf16.mxu0 %v572_v1 }
  0x18   : > { %502 = vmatpush3.bf16.msra.mxu0 %v543_v5 }
  0x19   : > { %503 = vmatprep.subr.bf16.mxu0 %v572_v1 }
  0x1c   : > { %504 = vmatpush3.bf16.msra.mxu0 %v544_v6 }
  0x1d   : > { %505 = vmatprep.subr.bf16.mxu0 %v572_v1 }
  0x20   : > { %506 = vmatpush3.bf16.msra.mxu0 %v545_v7 }
  0x21   : > { %507 = vmatprep.subr.bf16.mxu0 %v572_v1 }
  0x24   : > { %508 = vmatpush3.bf16.msra.mxu0 %v546_v8 }
  0x27   : > { %510 = vmatmul.mubr.bf16.vlgmr.msra.gmra.mrb[0].mxu0 %v547_v9 }
  0xfa   : > { %v333_v11 = vpop.f32.mrb[0].mxu0 }
  0xfb   : > { %v347_v12 = vmul.f32 %v469_v10, %v333_v11  ;;  %v511_v13 = vpop.f32.mrb[1].mxu0 }
  0xfc   : > { %v336_v15 = vpop.f32.mrb[2].mxu0 }
  0xfd   : > { %v348_v16 = vmul.f32 %v469_v10, %v336_v15  ;;  %v512_v17 = vpop.f32.mrb[3].mxu0  ;;  %v356_v18 = vadd.f32 %v470_v14, %v347_v12 }
  0xff   : > { %v357_v19 = vadd.f32 %v470_v14, %v348_v16 }
 0x101   : > { %v482_v20 = vpack.c.bf16 %v357_v19, %v356_v18 }
 0x103   : > { %483 = vst [vmem:[%s219_s23] sm:$0xff] %v482_v20  }
 0x104 PF: > { %s14_s17 = sadd.s32 1, %s570_s17   ;;  %s674_s15 = smov %s566_s16 }
 0x105   : > { %p11_p5 = scmp.ge.s32.totalorder %s14_s17, 4   ;;  %s675_s16 = smov %s677_s18 }
 0x107   :  { %13 = sbr.rel (!%p11_p5) target bundleno = 2 (0x2), region = 67 }

// kernel: _lambda_.10
= control target key start
LH: loop header
LB: loop body
LE: loop exit
PB: predicated region body
PF: predicated region fallthrough
CT: control target
= control target key end

     0   :  { %s967_s15 = smov 0   ;;  %s969_s16 = smov 0   ;;  %s1116_s0 = inlined_call_operand.vmem [shape: bf16[2,18,128], index: 0, kind: input, shape index: {}]   ;;  %s1117_s1 = inlined_call_operand.vmem [shape: bf16[3,128,128], index: 1, kind: input, shape index: {}]   ;;  %s1118_s2 = inlined_call_operand.vmem [shape: f32[1,128], index: 2, kind: input, shape index: {}]   ;;  %s1119_s3 = inlined_call_operand.vmem [shape: f32[1,128], index: 3, kind: input, shape index: {}]   ;;  %s1120_s4 = inlined_call_operand.vmem [shape: bf16[2,16,128], index: 4, kind: output, shape index: {}]  }
   0x1   :  { %s971_s17 = smov 0  }
   0x2 LB: > { %s26_s18 = sadd.s32 1, %s934_s16  ;;  %p694_p0 = scmp.ge.s32.totalorder %s938_s17, 1  ;;  %s938_s17 = sphi %s971_s17, %s14_s17   ;;  %s934_s16 = sphi %s969_s16, %s1122_s16   ;;  %s930_s15 = sphi %s967_s15, %s1121_s15  }
   0x3   : > { %p28_p1 = scmp.ge.s32.totalorder %s26_s18, 2  ;;  %p176_p2 = scmp.lt.s32.totalorder %s938_s17, 3 }
   0x5   : > { %s1124_s18 = smov (%p28_p1, %s26_s18), 0  ;;  %p177_p3 = pnand %p694_p0, %p176_p2 }
   0x6   : > { %v890_v0 = vld [vmem:[%s1117_s1] sm:$0xff] (!%p177_p3)   ;;  %v940_v1 = vmov (!%p177_p3), 0.0   ;;  %v891_v2 = vld [vmem:[%s1117_s1 + $0x8] sm:$0xff] (!%p177_p3)   ;;  %vm941_vm0 = vmmov (!%p177_p3), 0   ;;  %p206_p4 = scmp.lt.s32.totalorder (!%p177_p3), %s930_s15, 1  ;;  %v892_v3 = vld [vmem:[%s1117_s1 + $0x10] sm:$0xff] (!%p177_p3)  }
   0x7   : > { %180 = sbr.rel (%p177_p3) target bundleno = 296 (0x128), region = 36  ;;  %817 = vmatprep.subr.bf16.mxu0 (!%p177_p3), %v940_v1  ;;  %797 = vmatprep.subr.bf16.mxu1 (!%p177_p3), %v940_v1  ;;  %v898_v4 = vld [vmem:[%s1117_s1 + $0x40] sm:$0xff] (!%p177_p3)   ;;  %v893_v5 = vld [vmem:[%s1117_s1 + $0x18] sm:$0xff] (!%p177_p3)   ;;  %v901_v6 = vld [vmem:[%s1117_s1 + $0x48] sm:$0xff] (!%p177_p3)   ;;  %vm271_vm1 = vsmask.f32 (!%p177_p3), 7424 }
   0x8   : > { %818 = vmatpush3.bf16.msra.mxu0 (!%p177_p3), %v890_v0  ;;  %833 = vmatprep.mubr.msk.bf16.mxu0 (!%p177_p3), %vm941_vm0, %v940_v1  ;;  %v894_v7 = vld [vmem:[%s1117_s1 + $0x20] sm:$0xff] (!%p177_p3)   ;;  %v903_v8 = vld [vmem:[%s1117_s1 + $0x50] sm:$0xff] (!%p177_p3)   ;;  %v895_v9 = vld [vmem:[%s1117_s1 + $0x28] sm:$0xff] (!%p177_p3)   ;;  %vm481_vm2 = vcmask (!%p177_p3), 1046528  }
   0x9   : > { %819 = vmatprep.subr.bf16.mxu0 (!%p177_p3), %v940_v1  ;;  %813 = vmatprep.mubr.msk.bf16.mxu1 (!%p177_p3), %vm941_vm0, %v940_v1  ;;  %v905_v10 = vld [vmem:[%s1117_s1 + $0x58] sm:$0xff] (!%p177_p3)   ;;  %v896_v11 = vld [vmem:[%s1117_s1 + $0x30] sm:$0xff] (!%p177_p3)   ;;  %v907_v12 = vld [vmem:[%s1117_s1 + $0x60] sm:$0xff] (!%p177_p3)  }
   0xa   : > { %798 = vmatpush3.bf16.msra.mxu1 (!%p177_p3), %v898_v4  ;;  %v897_v14 = vld [vmem:[%s1117_s1 + $0x38] sm:$0xff] (!%p177_p3)   ;;  %v909_v15 = vld [vmem:[%s1117_s1 + $0x68] sm:$0xff] (!%p177_p3)   ;;  %v900_v18 = vld [vmem:[%s1117_s1 + $0x80] sm:$0xff] (!%p177_p3)  }
   0xb   : > { %799 = vmatprep.subr.bf16.mxu1 (!%p177_p3), %v940_v1  ;;  %v911_v19 = vld [vmem:[%s1117_s1 + $0x70] sm:$0xff] (!%p177_p3)   ;;  %v902_v23 = vld [vmem:[%s1117_s1 + $0x88] sm:$0xff] (!%p177_p3)   ;;  %v913_v24 = vld [vmem:[%s1117_s1 + $0x78] sm:$0xff] (!%p177_p3)  }
   0xc   : > { %820 = vmatpush3.bf16.msra.mxu0 (!%p177_p3), %v891_v2  ;;  %v904_v27 = vld [vmem:[%s1117_s1 + $0x90] sm:$0xff] (!%p177_p3)   ;;  %v906_v29 = vld [vmem:[%s1117_s1 + $0x98] sm:$0xff] (!%p177_p3)   ;;  %v908_v30 = vld [vmem:[%s1117_s1 + $0xa0] sm:$0xff] (!%p177_p3)  }
   0xd   : > { %821 = vmatprep.subr.bf16.mxu0 (!%p177_p3), %v940_v1  ;;  %v910_v31 = vld [vmem:[%s1117_s1 + $0xa8] sm:$0xff] (!%p177_p3)   ;;  %v912_v32 = vld [vmem:[%s1117_s1 + $0xb0] sm:$0xff] (!%p177_p3)   ;;  %v915_v33 = vld [vmem:[%s1117_s1 + $0xb8] sm:$0xff] (!%p177_p3)  }
   0xe   : > { %s1126_s15 = smov (!%p206_p4, %s930_s15), 1  ;;  %800 = vmatpush3.bf16.msra.mxu1 %v901_v6  ;;  %v756_v42 = vld [vmem:[%s1118_s2] ss:$0 sm:$0xff] }
   0xf   : > { %s863_s25 = smul.u32 12, %s1126_s15  ;;  %801 = vmatprep.subr.bf16.mxu1 %v940_v1  ;;  %v757_v45 = vld [vmem:[%s1119_s3] ss:$0 sm:$0xff]  ;;  %s762_s6 = sshll.u32 %s1126_s15, 3 }
  0x10   : > { %822 = vmatpush3.bf16.msra.mxu0 %v892_v3  ;;  %s219_s8 = scalar_lea.vmem %s1120_s4, %s762_s6 }
  0x11   : > { %s1011_s30 = scalar_lea.vmem %s1116_s0, %s863_s25  ;;  %823 = vmatprep.subr.bf16.mxu0 %v940_v1 }
  0x12   : > { %802 = vmatpush3.bf16.msra.mxu1 %v903_v8  ;;  %v899_v13 = vld [vmem:[%s1011_s30] sm:$0xff]   ;;  %v914_v16 = vld [vmem:[%s1011_s30 + $0x8] ss:$0 sps:$4 sm:$0x11]  }
  0x13   : > { %803 = vmatprep.subr.bf16.mxu1 %v940_v1  ;;  %v275_v17 = vshll.u32 %v899_v13, 16  ;;  %v273_v20 = vshrl.u32 %v899_v13, 16  ;;  %v280_v22 = vshll.u32 %v914_v16, 16  ;;  %v482_v34 = vrot.slane %v899_v13, 1 }
  0x14   : > { %824 = vmatpush3.bf16.msra.mxu0 %v893_v5  ;;  %v483_v35 = vrot.slane %v914_v16, 1 }
  0x15   : > { %825 = vmatprep.subr.bf16.mxu0 %v940_v1  ;;  %v277_v21 = vrot.slane %v275_v17, 1  ;;  %v282_v26 = vrot.slane %v280_v22, 1 }
  0x16   : > { %804 = vmatpush3.bf16.msra.mxu1 %v905_v10  ;;  %v484_v36 = vsel %vm481_vm2, %v482_v34, %v483_v35 }
  0x17   : > { %805 = vmatprep.subr.bf16.mxu1 %v940_v1  ;;  %v278_v25 = vor.u32 %v277_v21, %v273_v20 }
  0x18   : > { %826 = vmatpush3.bf16.msra.mxu0 %v894_v7 }
  0x19   : > { %827 = vmatprep.subr.bf16.mxu0 %v940_v1  ;;  %v283_v28 = vsel %vm271_vm1, %v278_v25, %v282_v26 }
  0x1a   : > { %806 = vmatpush3.bf16.msra.mxu1 %v907_v12 }
  0x1b   : > { %807 = vmatprep.subr.bf16.mxu1 %v940_v1 }
  0x1c   : > { %828 = vmatpush3.bf16.msra.mxu0 %v895_v9 }
  0x1d   : > { %829 = vmatprep.subr.bf16.mxu0 %v940_v1 }
  0x1e   : > { %808 = vmatpush3.bf16.msra.mxu1 %v909_v15 }
  0x1f   : > { %809 = vmatprep.subr.bf16.mxu1 %v940_v1 }
  0x20   : > { %830 = vmatpush3.bf16.msra.mxu0 %v896_v11 }
  0x21   : > { %831 = vmatprep.subr.bf16.mxu0 %v940_v1 }
  0x22   : > { %810 = vmatpush3.bf16.msra.mxu1 %v911_v19 }
  0x23   : > { %811 = vmatprep.subr.bf16.mxu1 %v940_v1 }
  0x24   : > { %832 = vmatpush3.bf16.msra.mxu0 %v897_v14 }
  0x25   : > { %837 = vmatprep.subr.bf16.mxu0 %v940_v1 }
  0x26   : > { %812 = vmatpush3.bf16.msra.mxu1 %v913_v24 }
  0x27   : > { %834 = vmatmul.mubr.bf16.vlgmr.msra.gmra.mrb[0].mxu0 %v899_v13 }
  0x28   : > { %838 = vmatpush3.bf16.msra.mxu0 %v900_v18  ;;  %853 = vmatprep.mubr.msk.bf16.mxu0 %vm941_vm0, %v940_v1 }
  0x29   : > { %839 = vmatprep.subr.bf16.mxu0 %v940_v1  ;;  %814 = vmatmul.mubr.bf16.vlgmr.msra.gmra.mrb[0].mxu1 %v283_v28 }
  0x2c   : > { %840 = vmatpush3.bf16.msra.mxu0 %v902_v23 }
  0x2d   : > { %841 = vmatprep.subr.bf16.mxu0 %v940_v1 }
  0x30   : > { %842 = vmatpush3.bf16.msra.mxu0 %v904_v27 }
  0x31   : > { %843 = vmatprep.subr.bf16.mxu0 %v940_v1 }
  0x34   : > { %844 = vmatpush3.bf16.msra.mxu0 %v906_v29 }
  0x35   : > { %845 = vmatprep.subr.bf16.mxu0 %v940_v1 }
  0x38   : > { %846 = vmatpush3.bf16.msra.mxu0 %v908_v30 }
  0x39   : > { %847 = vmatprep.subr.bf16.mxu0 %v940_v1 }
  0x3c   : > { %848 = vmatpush3.bf16.msra.mxu0 %v910_v31 }
  0x3d   : > { %849 = vmatprep.subr.bf16.mxu0 %v940_v1 }
  0x40   : > { %850 = vmatpush3.bf16.msra.mxu0 %v912_v32 }
  0x41   : > { %851 = vmatprep.subr.bf16.mxu0 %v940_v1 }
  0x44   : > { %852 = vmatpush3.bf16.msra.mxu0 %v915_v33 }
  0x47   : > { %854 = vmatmul.mubr.bf16.vlgmr.msra.gmra.mrb[0].mxu0 %v484_v36 }
  0xfc   : > { %v367_v37 = vpop.f32.mrb[0].mxu1 }
  0xfd   : > { %v815_v38 = vpop.f32.mrb[1].mxu1 }
  0xfe   : > { %v370_v39 = vpop.f32.mrb[2].mxu1 }
  0xff   : > { %v816_v40 = vpop.f32.mrb[3].mxu1 }
 0x11a   : > { %v568_v41 = vpop.f32.mrb[0].mxu0 }
 0x11b   : > { %v857_v43 = vadd.f32 %v568_v41, %v367_v37  ;;  %v855_v44 = vpop.f32.mrb[1].mxu0 }
 0x11c   : > { %v571_v46 = vpop.f32.mrb[2].mxu0 }
 0x11d   : > { %v584_v47 = vmul.f32 %v857_v43, %v756_v42  ;;  %v858_v48 = vadd.f32 %v571_v46, %v370_v39  ;;  %v856_v49 = vpop.f32.mrb[3].mxu0 }
 0x11f   : > { %v593_v50 = vadd.f32 %v757_v45, %v584_v47  ;;  %v585_v51 = vmul.f32 %v858_v48, %v756_v42 }
 0x121   : > { %v594_v52 = vadd.f32 %v757_v45, %v585_v51  ;;  %v595_v53 = vmax.f32 %v593_v50, 0.0 }
 0x123   : > { %v596_v54 = vmax.f32 %v594_v52, 0.0 }
 0x125   : > { %v768_v55 = vpack.c.bf16 %v596_v54, %v595_v53 }
 0x127   : > { %769 = vst [vmem:[%s219_s8] sm:$0xff] %v768_v55  }
 0x128 PF: > { %s14_s17 = sadd.s32 1, %s938_s17   ;;  %s1121_s15 = smov %s934_s16 }
 0x129   : > { %p11_p5 = scmp.ge.s32.totalorder %s14_s17, 4   ;;  %s1122_s16 = smov %s1124_s18 }
 0x12b   :  { %13 = sbr.rel (!%p11_p5) target bundleno = 2 (0x2), region = 69 }

// kernel: _lambda_.9
= control target key start
LH: loop header
LB: loop body
LE: loop exit
PB: predicated region body
PF: predicated region fallthrough
CT: control target
= control target key end

     0   :  { %9 = vsyncpa [#allocation3], 0  ;;  %s736_s15 = smov 0   ;;  %s738_s16 = smov 0   ;;  %s828_s0 = inlined_call_operand.vmem [shape: bf16[2,18,3], index: 0, kind: input, shape index: {}]   ;;  %s829_s1 = inlined_call_operand.hbm [shape: bf16[3,3,128], index: 1, kind: input, shape index: {}]   ;;  %s830_s2 = inlined_call_operand.vmem [shape: f32[1,128], index: 2, kind: input, shape index: {}]   ;;  %s831_s3 = inlined_call_operand.vmem [shape: f32[1,128], index: 3, kind: input, shape index: {}]   ;;  %s832_s4 = inlined_call_operand.vmem [shape: bf16[2,16,128], index: 4, kind: output, shape index: {}]  }
   0x1   :  { %s740_s17 = smov 0  }
   0x2 LB: > { %s547_s18 = sadd.s32 4294967295, %s703_s17   ;;  %s27_s19 = sadd.s32 1, %s699_s16  ;;  %s703_s17 = sphi %s740_s17, %s15_s17   ;;  %s699_s16 = sphi %s738_s16, %s842_s16   ;;  %s695_s15 = sphi %s736_s15, %s841_s15  }
   0x3   : > { %p29_p0 = scmp.ge.s32.totalorder %s27_s19, 2  ;;  %p549_p1 = scmp.ge.s32.totalorder %s703_s17, 1 }
   0x4   : > { %p149_p2 = scmp.lt.s32.totalorder %s703_s17, 3  ;;  %p761_p4 = scmp.eq.s32.totalorder %s547_s18, 0 }
   0x5   : > { %s844_s19 = smov (%p29_p0, %s27_s19), 0  ;;  %s705_s22 = smov [#allocation2]  }
   0x6   : > { %p757_p3 = pnand %p549_p1, %p149_p2  ;;  %s161_s23 = sshll.u32 %s705_s22, 4  ;;  %s162_s23 = int_to_ptr.vmem [resolvable:$true] %s161_s23 }
   0x7   : > { %s837_s21 = scalar_select %p761_p4, 1, 0 }
   0x8   : > { %s836_s20 = scalar_select %p757_p3, 1, 0 }
   0x9   : > { %p611_p5 = pneg %p757_p3  ;;  %s649_s27 = scalar_lea.hbm %s829_s1, 96 }
   0xa   : > { %p650_p7 = scmp.ne.s32.totalorder %s829_s1, %s649_s27  ;;  %p656_p11 = scmp.lt.u32.totalorder %s649_s27, %s829_s1 }
   0xb   : > { %p769_p6 = pnand %p761_p4, %p611_p5 }
   0xd   : > { %p651_p8 = pneg %p769_p6 }
   0xf   : > { %p652_p9 = pnand %p651_p8, %p650_p7 }
  0x11   : > { %p653_p10 = pneg %p652_p9 }
  0x13   : > { %p658_p12 = pnand %p656_p11, %p653_p10 }
  0x15   : > { %661 = shalt.err (!%p658_p12)
}
  0x16   : > { %s662_s6 = scalar_lea.vmem %s162_s23, 96  ;;  %p670_p2 = scmp.lt.s32.totalorder %s162_s23, %s162_s23 }
  0x17   : > { %p663_p13 = scmp.ne.s32.totalorder %s162_s23, %s662_s6  ;;  %p671_p5 = scmp.lt.s32.totalorder %s662_s6, %s662_s6 }
  0x19   : > { %p665_p0 = pnand %p663_p13, %p651_p8  ;;  %p672_p4 = por %p671_p5, %p670_p2 }
  0x1b   : > { %p666_p1 = pneg %p665_p0 }
  0x1d   : > { %p673_p3 = pnand %p672_p4, %p666_p1 }
  0x1f   : > { %676 = shalt.err (!%p673_p3)
}
  0x20   : > { %s706_s7 = smov 32   ;;  %s707_s8 = smov 2  }
  0x21   : > { %614 = dma.hbm_to_vmem [thread:$0]  (!%p769_p6), %s829_s1, 96, %s162_s23, [#allocation3], %s706_s7, %s706_s7, %s707_s8  }
  0x22   : > { %p839_p7 = scmp.ne.s32.totalorder %s836_s20, 0 }
  0x23   : > { %p840_p9 = scmp.ne.s32.totalorder (!%p839_p7), %s837_s21, 0 }
  0x24   : > { %191 = sbr.rel (%p839_p7) target bundleno = 290 (0x122), region = 36 }
  0x2b   : > { %690 = dma.done.wait (%p840_p9), [#allocation3], 96  }
  0x2c   : > { %692 = vsyncadd (%p840_p9), [#allocation3], 4294967200  ;;  %vm273_vm0 = vcmask 1040384   ;;  %v708_v0 = vmov 0.0   ;;  %p221_p3 = scmp.lt.s32.totalorder %s695_s15, 1  ;;  %vm274_vm1 = vcmask 1041408  }
  0x2d   : > { %588 = vmatprep.subr.bf16.mxu0 %v708_v0  ;;  %582 = vmatprep.subr.bf16.mxu1 %v708_v0  ;;  %v709_v1 = vmov 65535   ;;  %vm710_vm2 = vmmov 0   ;;  %v245_v4 = vld [vmem:[#allocation2] sm:$0x3]  ;;  %v368_v5 = vld [vmem:[#allocation2 + $0x4] sm:$0x3] }
  0x2e   : > { %v275_v2 = vsel %vm273_vm0, 4294967295, %v709_v1  ;;  %590 = vmatprep.mubr.msk.bf16.mxu0 %vm710_vm2, %v708_v0  ;;  %584 = vmatprep.mubr.msk.bf16.mxu1 %vm710_vm2, %v708_v0  ;;  %s846_s15 = smov (!%p221_p3, %s695_s15), 1  ;;  %v247_v6 = vld [vmem:[#allocation2 + $0x2] sm:$0x3]  ;;  %vm269_vm3 = vcmask 23552   ;;  %vm369_vm5 = vcmask 1046528  }
  0x2f   : > { %v276_v3 = vsel %vm274_vm1, %v275_v2, 0  ;;  %s606_s11 = smul.u32 12, %s846_s15  ;;  %vm256_vm4 = vsmask.f32 7424  ;;  %v562_v27 = vld [vmem:[%s830_s2] ss:$0 sm:$0xff] }
  0x30   : > { %v324_v7 = vand.u32 %v276_v3, %v245_v4  ;;  %v278_v9 = vand.u32 %v276_v3, %v247_v6  ;;  %v377_v11 = vand.u32 %v368_v5, %v276_v3  ;;  %v563_v30 = vld [vmem:[%s831_s3] ss:$0 sm:$0xff]  ;;  %s568_s23 = sshll.u32 %s846_s15, 3 }
  0x31   : > { %s225_s14 = scalar_lea.vmem %s828_s0, %s606_s11  ;;  %s234_s26 = scalar_lea.vmem %s832_s4, %s568_s23 }
  0x32   : > { %v647_v8 = vld [vmem:[%s225_s14] sm:$0xff]   ;;  %v648_v10 = vld [vmem:[%s225_s14 + $0x8] ss:$0 sps:$4 sm:$0x11]   ;;  %589 = vmatpush3.bf16.msra.mxu0 %v324_v7  ;;  %583 = vmatpush3.bf16.msra.mxu1 %v278_v9 }
  0x33   : > { %v258_v12 = vshrl.u32 %v647_v8, 16  ;;  %v260_v13 = vshll.u32 %v647_v8, 16  ;;  %594 = vmatprep.subr.bf16.mxu0 %v708_v0  ;;  %v265_v14 = vshll.u32 %v648_v10, 16  ;;  %v370_v19 = vrot.slane %v647_v8, 1 }
  0x34   : > { %v371_v20 = vrot.slane %v648_v10, 1 }
  0x35   : > { %v262_v15 = vrot.slane %v260_v13, 1  ;;  %591 = vmatmul.mubr.msk.bf16.vlgmr.msra.gmra.mrb[0].mxu0 %vm269_vm3, %v647_v8  ;;  %v267_v16 = vrot.slane %v265_v14, 1 }
  0x36   : > { %595 = vmatpush3.bf16.msra.mxu0 %v377_v11  ;;  %596 = vmatprep.mubr.msk.bf16.mxu0 %vm710_vm2, %v708_v0  ;;  %v372_v21 = vsel %vm369_vm5, %v370_v19, %v371_v20 }
  0x37   : > { %v263_v17 = vor.u32 %v262_v15, %v258_v12 }
  0x39   : > { %v268_v18 = vsel %vm256_vm4, %v263_v17, %v267_v16 }
  0x3a   : > { %585 = vmatmul.mubr.msk.bf16.vlgmr.msra.gmra.mrb[0].mxu1 %vm269_vm3, %v268_v18 }
  0x41   : > { %597 = vmatmul.mubr.msk.bf16.vlgmr.msra.gmra.mrb[0].mxu0 %vm269_vm3, %v372_v21 }
 0x10d   : > { %v314_v22 = vpop.f32.mrb[0].mxu1 }
 0x10e   : > { %v586_v23 = vpop.f32.mrb[1].mxu1 }
 0x10f   : > { %v317_v24 = vpop.f32.mrb[2].mxu1 }
 0x110   : > { %v587_v25 = vpop.f32.mrb[3].mxu1 }
 0x114   : > { %v413_v26 = vpop.f32.mrb[0].mxu0 }
 0x115   : > { %v600_v28 = vadd.f32 %v413_v26, %v314_v22  ;;  %v598_v29 = vpop.f32.mrb[1].mxu0 }
 0x116   : > { %v416_v31 = vpop.f32.mrb[2].mxu0 }
 0x117   : > { %v429_v32 = vmul.f32 %v600_v28, %v562_v27  ;;  %v601_v33 = vadd.f32 %v416_v31, %v317_v24  ;;  %v599_v34 = vpop.f32.mrb[3].mxu0 }
 0x119   : > { %v438_v35 = vadd.f32 %v563_v30, %v429_v32  ;;  %v430_v36 = vmul.f32 %v601_v33, %v562_v27 }
 0x11b   : > { %v439_v37 = vadd.f32 %v563_v30, %v430_v36  ;;  %v440_v38 = vmax.f32 %v438_v35, 0.0 }
 0x11d   : > { %v441_v39 = vmax.f32 %v439_v37, 0.0 }
 0x11f   : > { %v574_v40 = vpack.c.bf16 %v441_v39, %v440_v38 }
 0x121   : > { %575 = vst [vmem:[%s234_s26] sm:$0xff] %v574_v40  }
 0x122 PF: > { %s15_s17 = sadd.s32 1, %s703_s17   ;;  %s841_s15 = smov %s699_s16 }
 0x123   : > { %p12_p4 = scmp.ge.s32.totalorder %s15_s17, 4   ;;  %s842_s16 = smov %s844_s19 }
 0x125   :  { %14 = sbr.rel (!%p12_p4) target bundleno = 2 (0x2), region = 74 }
 0x12c   :  { %482 = vsyncpa [#allocation3], 1 }
 0x12d   :  { %484 = vsyncpa [#allocation3 + $0x1], 1 }

// kernel: _lambda_.11
= control target key start
LH: loop header
LB: loop body
LE: loop exit
PB: predicated region body
PF: predicated region fallthrough
CT: control target
= control target key end

     0   :  { %s1048_s18 = smov 0   ;;  %s1050_s19 = smov 0   ;;  %s1207_s0 = inlined_call_operand.vmem [shape: bf16[2,18,128], index: 0, kind: input, shape index: {}]   ;;  %s1208_s1 = inlined_call_operand.vmem [shape: bf16[3,128,128], index: 1, kind: input, shape index: {}]   ;;  %s1209_s2 = inlined_call_operand.vmem [shape: f32[1,128], index: 2, kind: input, shape index: {}]   ;;  %s1210_s3 = inlined_call_operand.vmem [shape: f32[1,128], index: 3, kind: input, shape index: {}]   ;;  %s1211_s4 = inlined_call_operand.vmem [shape: bf16[2,16,128], index: 4, kind: output, shape index: {0}]   ;;  %s1212_s5 = inlined_call_operand.vmem [shape: f32[2,1,128], index: 5, kind: output, shape index: {1}]  }
   0x1   :  { %s1052_s20 = smov 0  }
   0x2 LB: > { %s28_s21 = sadd.s32 1, %s1010_s19  ;;  %p770_p0 = scmp.ge.s32.totalorder %s1014_s20, 1  ;;  %s1014_s20 = sphi %s1052_s20, %s16_s20   ;;  %s1010_s19 = sphi %s1050_s19, %s1214_s19   ;;  %s1006_s18 = sphi %s1048_s18, %s1213_s18  }
   0x3   : > { %p30_p1 = scmp.ge.s32.totalorder %s28_s21, 2  ;;  %p204_p2 = scmp.lt.s32.totalorder %s1014_s20, 3 }
   0x5   : > { %s1216_s21 = smov (%p30_p1, %s28_s21), 0  ;;  %p205_p3 = pnand %p770_p0, %p204_p2 }
   0x6   : > { %v966_v0 = vld [vmem:[%s1208_s1] sm:$0xff] (!%p205_p3)   ;;  %v1016_v1 = vmov (!%p205_p3), 0.0   ;;  %v967_v2 = vld [vmem:[%s1208_s1 + $0x8] sm:$0xff] (!%p205_p3)   ;;  %vm1017_vm0 = vmmov (!%p205_p3), 0   ;;  %p239_p4 = scmp.lt.s32.totalorder (!%p205_p3), %s1006_s18, 1  ;;  %v968_v3 = vld [vmem:[%s1208_s1 + $0x10] sm:$0xff] (!%p205_p3)  }
   0x7   : > { %208 = sbr.rel (%p205_p3) target bundleno = 310 (0x136), region = 36  ;;  %893 = vmatprep.subr.bf16.mxu0 (!%p205_p3), %v1016_v1  ;;  %873 = vmatprep.subr.bf16.mxu1 (!%p205_p3), %v1016_v1  ;;  %v974_v4 = vld [vmem:[%s1208_s1 + $0x40] sm:$0xff] (!%p205_p3)   ;;  %v969_v5 = vld [vmem:[%s1208_s1 + $0x18] sm:$0xff] (!%p205_p3)   ;;  %v977_v6 = vld [vmem:[%s1208_s1 + $0x48] sm:$0xff] (!%p205_p3)   ;;  %vm307_vm1 = vsmask.f32 (!%p205_p3), 7424 }
   0x8   : > { %894 = vmatpush3.bf16.msra.mxu0 (!%p205_p3), %v966_v0  ;;  %909 = vmatprep.mubr.msk.bf16.mxu0 (!%p205_p3), %vm1017_vm0, %v1016_v1  ;;  %v970_v7 = vld [vmem:[%s1208_s1 + $0x20] sm:$0xff] (!%p205_p3)   ;;  %v979_v8 = vld [vmem:[%s1208_s1 + $0x50] sm:$0xff] (!%p205_p3)   ;;  %v971_v9 = vld [vmem:[%s1208_s1 + $0x28] sm:$0xff] (!%p205_p3)   ;;  %vm517_vm2 = vcmask (!%p205_p3), 1046528  }
   0x9   : > { %895 = vmatprep.subr.bf16.mxu0 (!%p205_p3), %v1016_v1  ;;  %889 = vmatprep.mubr.msk.bf16.mxu1 (!%p205_p3), %vm1017_vm0, %v1016_v1  ;;  %v981_v10 = vld [vmem:[%s1208_s1 + $0x58] sm:$0xff] (!%p205_p3)   ;;  %v972_v11 = vld [vmem:[%s1208_s1 + $0x30] sm:$0xff] (!%p205_p3)   ;;  %v983_v12 = vld [vmem:[%s1208_s1 + $0x60] sm:$0xff] (!%p205_p3)  }
   0xa   : > { %874 = vmatpush3.bf16.msra.mxu1 (!%p205_p3), %v974_v4  ;;  %v973_v14 = vld [vmem:[%s1208_s1 + $0x38] sm:$0xff] (!%p205_p3)   ;;  %v985_v15 = vld [vmem:[%s1208_s1 + $0x68] sm:$0xff] (!%p205_p3)   ;;  %v976_v18 = vld [vmem:[%s1208_s1 + $0x80] sm:$0xff] (!%p205_p3)  }
   0xb   : > { %875 = vmatprep.subr.bf16.mxu1 (!%p205_p3), %v1016_v1  ;;  %v987_v19 = vld [vmem:[%s1208_s1 + $0x70] sm:$0xff] (!%p205_p3)   ;;  %v978_v23 = vld [vmem:[%s1208_s1 + $0x88] sm:$0xff] (!%p205_p3)   ;;  %v989_v24 = vld [vmem:[%s1208_s1 + $0x78] sm:$0xff] (!%p205_p3)  }
   0xc   : > { %896 = vmatpush3.bf16.msra.mxu0 (!%p205_p3), %v967_v2  ;;  %v980_v27 = vld [vmem:[%s1208_s1 + $0x90] sm:$0xff] (!%p205_p3)   ;;  %v982_v29 = vld [vmem:[%s1208_s1 + $0x98] sm:$0xff] (!%p205_p3)   ;;  %v984_v30 = vld [vmem:[%s1208_s1 + $0xa0] sm:$0xff] (!%p205_p3)  }
   0xd   : > { %897 = vmatprep.subr.bf16.mxu0 (!%p205_p3), %v1016_v1  ;;  %v986_v31 = vld [vmem:[%s1208_s1 + $0xa8] sm:$0xff] (!%p205_p3)   ;;  %v988_v32 = vld [vmem:[%s1208_s1 + $0xb0] sm:$0xff] (!%p205_p3)   ;;  %v991_v33 = vld [vmem:[%s1208_s1 + $0xb8] sm:$0xff] (!%p205_p3)  }
   0xe   : > { %s1218_s18 = smov (!%p239_p4, %s1006_s18), 1  ;;  %876 = vmatpush3.bf16.msra.mxu1 %v977_v6  ;;  %v832_v42 = vld [vmem:[%s1209_s2] ss:$0 sm:$0xff] }
   0xf   : > { %s939_s28 = smul.u32 12, %s1218_s18  ;;  %877 = vmatprep.subr.bf16.mxu1 %v1016_v1  ;;  %s1182_s10 = scalar_lea.vmem %s1212_s5, %s1218_s18  ;;  %v833_v45 = vld [vmem:[%s1210_s3] ss:$0 sm:$0xff] }
  0x10   : > { %898 = vmatpush3.bf16.msra.mxu0 %v968_v3  ;;  %645 = vst [vmem:[%s1182_s10] sm:$0x1] %v1016_v1  ;;  %s838_s14 = sshll.u32 %s1218_s18, 3 }
  0x11   : > { %s1092_s8 = scalar_lea.vmem %s1207_s0, %s939_s28  ;;  %899 = vmatprep.subr.bf16.mxu0 %v1016_v1  ;;  %s252_s17 = scalar_lea.vmem %s1211_s4, %s838_s14 }
  0x12   : > { %878 = vmatpush3.bf16.msra.mxu1 %v979_v8  ;;  %v975_v13 = vld [vmem:[%s1092_s8] sm:$0xff]   ;;  %v990_v16 = vld [vmem:[%s1092_s8 + $0x8] ss:$0 sps:$4 sm:$0x11]  }
  0x13   : > { %879 = vmatprep.subr.bf16.mxu1 %v1016_v1  ;;  %v311_v17 = vshll.u32 %v975_v13, 16  ;;  %v309_v20 = vshrl.u32 %v975_v13, 16  ;;  %v316_v22 = vshll.u32 %v990_v16, 16  ;;  %v518_v34 = vrot.slane %v975_v13, 1 }
  0x14   : > { %900 = vmatpush3.bf16.msra.mxu0 %v969_v5  ;;  %v519_v35 = vrot.slane %v990_v16, 1 }
  0x15   : > { %901 = vmatprep.subr.bf16.mxu0 %v1016_v1  ;;  %v313_v21 = vrot.slane %v311_v17, 1  ;;  %v318_v26 = vrot.slane %v316_v22, 1 }
  0x16   : > { %880 = vmatpush3.bf16.msra.mxu1 %v981_v10  ;;  %v520_v36 = vsel %vm517_vm2, %v518_v34, %v519_v35 }
  0x17   : > { %881 = vmatprep.subr.bf16.mxu1 %v1016_v1  ;;  %v314_v25 = vor.u32 %v313_v21, %v309_v20  ;;  %v646_v62 = vld [vmem:[%s1182_s10] sm:$0x1] }
  0x18   : > { %902 = vmatpush3.bf16.msra.mxu0 %v970_v7 }
  0x19   : > { %903 = vmatprep.subr.bf16.mxu0 %v1016_v1  ;;  %v319_v28 = vsel %vm307_vm1, %v314_v25, %v318_v26 }
  0x1a   : > { %882 = vmatpush3.bf16.msra.mxu1 %v983_v12 }
  0x1b   : > { %883 = vmatprep.subr.bf16.mxu1 %v1016_v1 }
  0x1c   : > { %904 = vmatpush3.bf16.msra.mxu0 %v971_v9 }
  0x1d   : > { %905 = vmatprep.subr.bf16.mxu0 %v1016_v1 }
  0x1e   : > { %884 = vmatpush3.bf16.msra.mxu1 %v985_v15 }
  0x1f   : > { %885 = vmatprep.subr.bf16.mxu1 %v1016_v1 }
  0x20   : > { %906 = vmatpush3.bf16.msra.mxu0 %v972_v11 }
  0x21   : > { %907 = vmatprep.subr.bf16.mxu0 %v1016_v1 }
  0x22   : > { %886 = vmatpush3.bf16.msra.mxu1 %v987_v19 }
  0x23   : > { %887 = vmatprep.subr.bf16.mxu1 %v1016_v1 }
  0x24   : > { %908 = vmatpush3.bf16.msra.mxu0 %v973_v14 }
  0x25   : > { %913 = vmatprep.subr.bf16.mxu0 %v1016_v1 }
  0x26   : > { %888 = vmatpush3.bf16.msra.mxu1 %v989_v24 }
  0x27   : > { %910 = vmatmul.mubr.bf16.vlgmr.msra.gmra.mrb[0].mxu0 %v975_v13 }
  0x28   : > { %914 = vmatpush3.bf16.msra.mxu0 %v976_v18  ;;  %929 = vmatprep.mubr.msk.bf16.mxu0 %vm1017_vm0, %v1016_v1 }
  0x29   : > { %915 = vmatprep.subr.bf16.mxu0 %v1016_v1  ;;  %890 = vmatmul.mubr.bf16.vlgmr.msra.gmra.mrb[0].mxu1 %v319_v28 }
  0x2c   : > { %916 = vmatpush3.bf16.msra.mxu0 %v978_v23 }
  0x2d   : > { %917 = vmatprep.subr.bf16.mxu0 %v1016_v1 }
  0x30   : > { %918 = vmatpush3.bf16.msra.mxu0 %v980_v27 }
  0x31   : > { %919 = vmatprep.subr.bf16.mxu0 %v1016_v1 }
  0x34   : > { %920 = vmatpush3.bf16.msra.mxu0 %v982_v29 }
  0x35   : > { %921 = vmatprep.subr.bf16.mxu0 %v1016_v1 }
  0x38   : > { %922 = vmatpush3.bf16.msra.mxu0 %v984_v30 }
  0x39   : > { %923 = vmatprep.subr.bf16.mxu0 %v1016_v1 }
  0x3c   : > { %924 = vmatpush3.bf16.msra.mxu0 %v986_v31 }
  0x3d   : > { %925 = vmatprep.subr.bf16.mxu0 %v1016_v1 }
  0x40   : > { %926 = vmatpush3.bf16.msra.mxu0 %v988_v32 }
  0x41   : > { %927 = vmatprep.subr.bf16.mxu0 %v1016_v1 }
  0x44   : > { %928 = vmatpush3.bf16.msra.mxu0 %v991_v33 }
  0x47   : > { %930 = vmatmul.mubr.bf16.vlgmr.msra.gmra.mrb[0].mxu0 %v520_v36 }
  0xfc   : > { %v403_v37 = vpop.f32.mrb[0].mxu1 }
  0xfd   : > { %v891_v38 = vpop.f32.mrb[1].mxu1 }
  0xfe   : > { %v406_v39 = vpop.f32.mrb[2].mxu1 }
  0xff   : > { %v892_v40 = vpop.f32.mrb[3].mxu1 }
 0x11a   : > { %v604_v41 = vpop.f32.mrb[0].mxu0 }
 0x11b   : > { %v933_v43 = vadd.f32 %v604_v41, %v403_v37  ;;  %v931_v44 = vpop.f32.mrb[1].mxu0 }
 0x11c   : > { %v607_v46 = vpop.f32.mrb[2].mxu0 }
 0x11d   : > { %v620_v47 = vmul.f32 %v933_v43, %v832_v42  ;;  %v934_v48 = vadd.f32 %v607_v46, %v406_v39  ;;  %v932_v49 = vpop.f32.mrb[3].mxu0 }
 0x11f   : > { %v629_v50 = vadd.f32 %v833_v45, %v620_v47  ;;  %v621_v51 = vmul.f32 %v934_v48, %v832_v42 }
 0x121   : > { %v630_v52 = vadd.f32 %v833_v45, %v621_v51  ;;  %v647_v53 = vand.u32 2147483647, %v629_v50 }
 0x123   : > { %v844_v54 = vpack.c.bf16 %v630_v52, %v629_v50  ;;  %v648_v55 = vand.u32 2147483647, %v630_v52 }
 0x125   : > { %845 = vst [vmem:[%s252_s17] sm:$0xff] %v844_v54   ;;  %v649_v56 = vadd.f32 %v648_v55, %v647_v53 }
 0x127   : > { %v650_v57 = vrot.slane %v649_v56, 4 }
 0x129   : > { %v651_v58 = vadd.f32 %v650_v57, %v649_v56 }
 0x12b   : > { %v652_v59 = vrot.slane %v651_v58, 2 }
 0x12d   : > { %v653_v60 = vadd.f32 %v652_v59, %v651_v58 }
 0x12f   : > { %v654_v61 = vrot.slane %v653_v60, 1 }
 0x131   : > { %v655_v63 = vadd.f32 %v654_v61, %v653_v60 }
 0x133   : > { %v656_v0 = vadd.f32 %v655_v63, %v646_v62 }
 0x135   : > { %657 = vst [vmem:[%s1182_s10] sm:$0x1] %v656_v0 }
 0x136 PF: > { %s16_s20 = sadd.s32 1, %s1014_s20   ;;  %s1213_s18 = smov %s1010_s19 }
 0x137   : > { %p13_p5 = scmp.ge.s32.totalorder %s16_s20, 4   ;;  %s1214_s19 = smov %s1216_s21 }
 0x139   :  { %15 = sbr.rel (!%p13_p5) target bundleno = 2 (0x2), region = 85 }

// kernel: _lambda_.13
= control target key start
LH: loop header
LB: loop body
LE: loop exit
PB: predicated region body
PF: predicated region fallthrough
CT: control target
= control target key end

     0   :  { %s517_s12 = smov 0   ;;  %s519_s13 = smov 0   ;;  %s556_s0 = inlined_call_operand.vmem [shape: bf16[2,16,128], index: 0, kind: input, shape index: {}]   ;;  %s557_s1 = inlined_call_operand.vmem [shape: bf16[2,16,128], index: 1, kind: input, shape index: {}]   ;;  %s558_s2 = inlined_call_operand.vmem [shape: f32[2,1,128], index: 2, kind: input, shape index: {}]   ;;  %s559_s3 = inlined_call_operand.vmem [shape: bf16[2,16,128], index: 3, kind: output, shape index: {}]  }
   0x1   :  { %s521_s14 = smov 0  }
   0x2 LB: > { %s25_s15 = sadd.s32 1, %s491_s13  ;;  %p420_p0 = scmp.ge.s32.totalorder %s495_s14, 1  ;;  %s495_s14 = sphi %s521_s14, %s13_s14   ;;  %s491_s13 = sphi %s519_s13, %s561_s13   ;;  %s487_s12 = sphi %s517_s12, %s560_s12  }
   0x3   : > { %p27_p1 = scmp.ge.s32.totalorder %s25_s15, 2  ;;  %p183_p2 = scmp.lt.s32.totalorder %s495_s14, 3 }
   0x5   : > { %s563_s15 = smov (%p27_p1, %s25_s15), 0  ;;  %p184_p3 = pnand %p420_p0, %p183_p2 }
   0x6   : > { %p228_p4 = scmp.lt.s32.totalorder (!%p184_p3), %s487_s12, 1  ;;  %v271_v0 = vlaneseq (!%p184_p3) }
   0x7   : > { %187 = sbr.rel (%p184_p3) target bundleno = 34 (0x22), region = 32 }
   0x8   : > { %v272_v1 = vshrl.u32 (!%p184_p3), %v271_v0, 7 }
   0xa   : > { %v273_v2 = vsub.s32 (!%p184_p3), 0, %v272_v1 }
   0xe   : > { %s565_s12 = smov (!%p228_p4, %s487_s12), 1 }
   0xf   : > { %s431_s16 = sshll.u32 %s565_s12, 3  ;;  %s249_s19 = scalar_lea.vmem %s558_s2, %s565_s12 }
  0x10   : > { %s235_s22 = scalar_lea.vmem %s556_s0, %s431_s16  ;;  %v268_v3 = vld [vmem:[%s249_s19] sm:$0x1]  ;;  %s245_s25 = scalar_lea.vmem %s557_s1, %s431_s16 }
  0x11   : > { %v437_v4 = vld [vmem:[%s235_s22] sm:$0xff]   ;;  %v269_v5 = vsub.f32 0.0, %v268_v3  ;;  %v282_v9 = vrot.slane %v268_v3, %v273_v2  ;;  %s258_s28 = scalar_lea.vmem %s559_s3, %s431_s16 }
  0x12   : > { %v438_v6 = vunpack.c.l.bf16 %v437_v4  ;;  %v439_v7 = vunpack.c.h.bf16 %v437_v4  ;;  %v441_v10 = vld [vmem:[%s245_s25] sm:$0xff]  }
  0x13   : > { %v274_v8 = vrot.slane %v269_v5, %v273_v2  ;;  %v442_v13 = vunpack.c.l.bf16 %v441_v10  ;;  %v443_v14 = vunpack.c.h.bf16 %v441_v10 }
  0x15   : > { %v276_v11 = vmax.f32 %v274_v8, %v438_v6  ;;  %v277_v12 = vmax.f32 %v274_v8, %v439_v7 }
  0x17   : > { %v284_v15 = vmin.f32 %v282_v9, %v276_v11  ;;  %v285_v16 = vmin.f32 %v282_v9, %v277_v12 }
  0x19   : > { %v286_v17 = vsub.f32 %v438_v6, %v284_v15  ;;  %v287_v18 = vsub.f32 %v439_v7, %v285_v16 }
  0x1b   : > { %v288_v19 = vadd.f32 %v442_v13, %v286_v17  ;;  %v289_v20 = vadd.f32 %v443_v14, %v287_v18 }
  0x1d   : > { %v290_v21 = vmax.f32 %v288_v19, 0.0  ;;  %v291_v22 = vmax.f32 %v289_v20, 0.0 }
  0x1f   : > { %v447_v23 = vpack.c.bf16 %v291_v22, %v290_v21 }
  0x21   : > { %448 = vst [vmem:[%s258_s28] sm:$0xff] %v447_v23  }
  0x22 PF: > { %s13_s14 = sadd.s32 1, %s495_s14   ;;  %s560_s12 = smov %s491_s13 }
  0x23   : > { %p10_p5 = scmp.ge.s32.totalorder %s13_s14, 4   ;;  %s561_s13 = smov %s563_s15 }
  0x25   :  { %12 = sbr.rel (!%p10_p5) target bundleno = 2 (0x2), region = 68 }

// kernel: _lambda_.14
= control target key start
LH: loop header
LB: loop body
LE: loop exit
PB: predicated region body
PF: predicated region fallthrough
CT: control target
= control target key end

     0   :  { %s980_s18 = smov 0   ;;  %s982_s19 = smov 0   ;;  %s1136_s0 = inlined_call_operand.vmem [shape: bf16[2,9,128], index: 0, kind: input, shape index: {}]   ;;  %s1137_s1 = inlined_call_operand.vmem [shape: bf16[2,9,128], index: 1, kind: input, shape index: {}]   ;;  %s1138_s2 = inlined_call_operand.vmem [shape: bf16[3,128,128], index: 2, kind: input, shape index: {}]   ;;  %s1139_s3 = inlined_call_operand.vmem [shape: f32[1,128], index: 3, kind: input, shape index: {}]   ;;  %s1140_s4 = inlined_call_operand.vmem [shape: f32[1,128], index: 4, kind: input, shape index: {}]   ;;  %s1141_s5 = inlined_call_operand.vmem [shape: bf16[2,8,128], index: 5, kind: output, shape index: {}]  }
   0x1   :  { %s984_s20 = smov 0  }
   0x2 LB: > { %s27_s21 = sadd.s32 1, %s942_s19  ;;  %p712_p0 = scmp.ge.s32.totalorder %s946_s20, 1  ;;  %s946_s20 = sphi %s984_s20, %s15_s20   ;;  %s942_s19 = sphi %s982_s19, %s1143_s19   ;;  %s938_s18 = sphi %s980_s18, %s1142_s18  }
   0x3   : > { %p29_p1 = scmp.ge.s32.totalorder %s27_s21, 2  ;;  %p211_p2 = scmp.lt.s32.totalorder %s946_s20, 3 }
   0x5   : > { %s1145_s21 = smov (%p29_p1, %s27_s21), 0  ;;  %p212_p3 = pnand %p712_p0, %p211_p2 }
   0x6   : > { %v899_v0 = vld [vmem:[%s1138_s2] sm:$0xff] (!%p212_p3)   ;;  %v948_v1 = vmov (!%p212_p3), 0.0   ;;  %v900_v2 = vld [vmem:[%s1138_s2 + $0x8] sm:$0xff] (!%p212_p3)   ;;  %vm949_vm0 = vmmov (!%p212_p3), 0   ;;  %v901_v3 = vld [vmem:[%s1138_s2 + $0x10] sm:$0xff] (!%p212_p3)   ;;  %p246_p4 = scmp.lt.s32.totalorder (!%p212_p3), %s938_s18, 1 }
   0x7   : > { %215 = sbr.rel (%p212_p3) target bundleno = 294 (0x126), region = 40  ;;  %828 = vmatprep.subr.bf16.mxu0 (!%p212_p3), %v948_v1  ;;  %808 = vmatprep.subr.bf16.mxu1 (!%p212_p3), %v948_v1  ;;  %v907_v4 = vld [vmem:[%s1138_s2 + $0x80] sm:$0xff] (!%p212_p3)   ;;  %v902_v5 = vld [vmem:[%s1138_s2 + $0x18] sm:$0xff] (!%p212_p3)   ;;  %v910_v6 = vld [vmem:[%s1138_s2 + $0x88] sm:$0xff] (!%p212_p3)  }
   0x8   : > { %829 = vmatpush3.bf16.msra.mxu0 (!%p212_p3), %v899_v0  ;;  %844 = vmatprep.mubr.msk.bf16.mxu0 (!%p212_p3), %vm949_vm0, %v948_v1  ;;  %v903_v7 = vld [vmem:[%s1138_s2 + $0x20] sm:$0xff] (!%p212_p3)   ;;  %v912_v8 = vld [vmem:[%s1138_s2 + $0x90] sm:$0xff] (!%p212_p3)   ;;  %v904_v9 = vld [vmem:[%s1138_s2 + $0x28] sm:$0xff] (!%p212_p3)  }
   0x9   : > { %830 = vmatprep.subr.bf16.mxu0 (!%p212_p3), %v948_v1  ;;  %824 = vmatprep.mubr.msk.bf16.mxu1 (!%p212_p3), %vm949_vm0, %v948_v1  ;;  %v914_v10 = vld [vmem:[%s1138_s2 + $0x98] sm:$0xff] (!%p212_p3)   ;;  %v905_v11 = vld [vmem:[%s1138_s2 + $0x30] sm:$0xff] (!%p212_p3)   ;;  %v916_v13 = vld [vmem:[%s1138_s2 + $0xa0] sm:$0xff] (!%p212_p3)  }
   0xa   : > { %809 = vmatpush3.bf16.msra.mxu1 (!%p212_p3), %v907_v4  ;;  %v906_v16 = vld [vmem:[%s1138_s2 + $0x38] sm:$0xff] (!%p212_p3)   ;;  %v918_v17 = vld [vmem:[%s1138_s2 + $0xa8] sm:$0xff] (!%p212_p3)   ;;  %v909_v19 = vld [vmem:[%s1138_s2 + $0x40] sm:$0xff] (!%p212_p3)  }
   0xb   : > { %810 = vmatprep.subr.bf16.mxu1 (!%p212_p3), %v948_v1  ;;  %v920_v20 = vld [vmem:[%s1138_s2 + $0xb0] sm:$0xff] (!%p212_p3)   ;;  %v911_v23 = vld [vmem:[%s1138_s2 + $0x48] sm:$0xff] (!%p212_p3)   ;;  %v922_v24 = vld [vmem:[%s1138_s2 + $0xb8] sm:$0xff] (!%p212_p3)  }
   0xc   : > { %831 = vmatpush3.bf16.msra.mxu0 (!%p212_p3), %v900_v2  ;;  %v913_v26 = vld [vmem:[%s1138_s2 + $0x50] sm:$0xff] (!%p212_p3)   ;;  %v915_v27 = vld [vmem:[%s1138_s2 + $0x58] sm:$0xff] (!%p212_p3)   ;;  %v917_v28 = vld [vmem:[%s1138_s2 + $0x60] sm:$0xff] (!%p212_p3)  }
   0xd   : > { %832 = vmatprep.subr.bf16.mxu0 (!%p212_p3), %v948_v1  ;;  %v919_v29 = vld [vmem:[%s1138_s2 + $0x68] sm:$0xff] (!%p212_p3)   ;;  %v921_v30 = vld [vmem:[%s1138_s2 + $0x70] sm:$0xff] (!%p212_p3)   ;;  %v923_v31 = vld [vmem:[%s1138_s2 + $0x78] sm:$0xff] (!%p212_p3)  }
   0xe   : > { %s1147_s18 = smov (!%p246_p4, %s938_s18), 1  ;;  %811 = vmatpush3.bf16.msra.mxu1 %v910_v6  ;;  %v775_v38 = vld [vmem:[%s1139_s3] ss:$0 sm:$0xff] }
   0xf   : > { %812 = vmatprep.subr.bf16.mxu1 %v948_v1  ;;  %s779_s15 = sshll.u32 %s1147_s18, 3  ;;  %v776_v41 = vld [vmem:[%s1140_s4] ss:$0 sm:$0xff] }
  0x10   : > { %833 = vmatpush3.bf16.msra.mxu0 %v901_v3  ;;  %s250_s26 = scalar_lea.vmem %s1136_s0, %s779_s15  ;;  %s255_s10 = scalar_lea.vmem %s1137_s1, %s779_s15 }
  0x11   : > { %834 = vmatprep.subr.bf16.mxu0 %v948_v1  ;;  %v270_v12 = vld [vmem:[%s250_s26 + $0x4] sm:$0x1]  ;;  %v269_v14 = vld [vmem:[%s250_s26] sm:$0xf]  ;;  %s717_s15 = sshll.u32 %s1147_s18, 2 }
  0x12   : > { %813 = vmatpush3.bf16.msra.mxu1 %v912_v8  ;;  %v734_v15 = vcombine.low %v269_v14, %v270_v12  ;;  %v495_v32 = vld [vmem:[%s255_s10] sm:$0xf]  ;;  %s262_s22 = scalar_lea.vmem %s1141_s5, %s717_s15 }
  0x13   : > { %814 = vmatprep.subr.bf16.mxu1 %v948_v1 }
  0x14   : > { %835 = vmatpush3.bf16.msra.mxu0 %v902_v5  ;;  %v312_v18 = vshll.u32 %v734_v15, 16  ;;  %v310_v21 = vshrl.u32 %v734_v15, 16 }
  0x15   : > { %836 = vmatprep.subr.bf16.mxu0 %v948_v1 }
  0x16   : > { %815 = vmatpush3.bf16.msra.mxu1 %v914_v10  ;;  %v314_v22 = vrot.slane %v312_v18, 1 }
  0x17   : > { %816 = vmatprep.subr.bf16.mxu1 %v948_v1 }
  0x18   : > { %837 = vmatpush3.bf16.msra.mxu0 %v903_v7  ;;  %v315_v25 = vor.u32 %v314_v22, %v310_v21 }
  0x19   : > { %838 = vmatprep.subr.bf16.mxu0 %v948_v1 }
  0x1a   : > { %817 = vmatpush3.bf16.msra.mxu1 %v916_v13 }
  0x1b   : > { %818 = vmatprep.subr.bf16.mxu1 %v948_v1 }
  0x1c   : > { %839 = vmatpush3.bf16.msra.mxu0 %v904_v9 }
  0x1d   : > { %840 = vmatprep.subr.bf16.mxu0 %v948_v1 }
  0x1e   : > { %819 = vmatpush3.bf16.msra.mxu1 %v918_v17 }
  0x1f   : > { %820 = vmatprep.subr.bf16.mxu1 %v948_v1 }
  0x20   : > { %841 = vmatpush3.bf16.msra.mxu0 %v905_v11 }
  0x21   : > { %842 = vmatprep.subr.bf16.mxu0 %v948_v1 }
  0x22   : > { %821 = vmatpush3.bf16.msra.mxu1 %v920_v20 }
  0x23   : > { %822 = vmatprep.subr.bf16.mxu1 %v948_v1 }
  0x24   : > { %843 = vmatpush3.bf16.msra.mxu0 %v906_v16 }
  0x25   : > { %848 = vmatprep.subr.bf16.mxu0 %v948_v1 }
  0x26   : > { %823 = vmatpush3.bf16.msra.mxu1 %v922_v24 }
  0x27   : > { %845 = vmatmul.mubr.bf16.vlgmr.msra.gmra.mrb[0].mxu0 %v269_v14 }
  0x28   : > { %849 = vmatpush3.bf16.msra.mxu0 %v909_v19  ;;  %864 = vmatprep.mubr.msk.bf16.mxu0 %vm949_vm0, %v948_v1 }
  0x29   : > { %850 = vmatprep.subr.bf16.mxu0 %v948_v1  ;;  %825 = vmatmul.mubr.bf16.vlgmr.msra.gmra.mrb[0].mxu1 %v315_v25 }
  0x2c   : > { %851 = vmatpush3.bf16.msra.mxu0 %v911_v23 }
  0x2d   : > { %852 = vmatprep.subr.bf16.mxu0 %v948_v1 }
  0x30   : > { %853 = vmatpush3.bf16.msra.mxu0 %v913_v26 }
  0x31   : > { %854 = vmatprep.subr.bf16.mxu0 %v948_v1 }
  0x34   : > { %855 = vmatpush3.bf16.msra.mxu0 %v915_v27 }
  0x35   : > { %856 = vmatprep.subr.bf16.mxu0 %v948_v1 }
  0x38   : > { %857 = vmatpush3.bf16.msra.mxu0 %v917_v28 }
  0x39   : > { %858 = vmatprep.subr.bf16.mxu0 %v948_v1 }
  0x3c   : > { %859 = vmatpush3.bf16.msra.mxu0 %v919_v29 }
  0x3d   : > { %860 = vmatprep.subr.bf16.mxu0 %v948_v1 }
  0x40   : > { %861 = vmatpush3.bf16.msra.mxu0 %v921_v30 }
  0x41   : > { %862 = vmatprep.subr.bf16.mxu0 %v948_v1 }
  0x44   : > { %863 = vmatpush3.bf16.msra.mxu0 %v923_v31 }
  0x47   : > { %865 = vmatmul.mubr.bf16.vlgmr.msra.gmra.mrb[0].mxu0 %v495_v32 }
  0xfc   : > { %v399_v33 = vpop.f32.mrb[0].mxu1 }
  0xfd   : > { %v826_v34 = vpop.f32.mrb[1].mxu1 }
  0xfe   : > { %v402_v35 = vpop.f32.mrb[2].mxu1 }
  0xff   : > { %v827_v36 = vpop.f32.mrb[3].mxu1 }
 0x11a   : > { %v595_v37 = vpop.f32.mrb[0].mxu0 }
 0x11b   : > { %v868_v39 = vadd.f32 %v595_v37, %v399_v33  ;;  %v866_v40 = vpop.f32.mrb[1].mxu0 }
 0x11c   : > { %v598_v42 = vpop.f32.mrb[2].mxu0 }
 0x11d   : > { %v609_v43 = vmul.f32 %v868_v39, %v775_v38  ;;  %v867_v44 = vpop.f32.mrb[3].mxu0 }
 0x11f   : > { %v617_v45 = vadd.f32 %v776_v41, %v609_v43 }
 0x121   : > { %v618_v46 = vmax.f32 %v617_v45, 0.0 }
 0x123   : > { %v619_v47 = vpack.c.bf16 %v618_v46, %v618_v46 }
 0x125   : > { %620 = vst [vmem:[%s262_s22] sm:$0xf] %v619_v47 }
 0x126 PF: > { %s15_s20 = sadd.s32 1, %s946_s20   ;;  %s1142_s18 = smov %s942_s19 }
 0x127   : > { %p12_p5 = scmp.ge.s32.totalorder %s15_s20, 4   ;;  %s1143_s19 = smov %s1145_s21 }
 0x129   :  { %14 = sbr.rel (!%p12_p5) target bundleno = 2 (0x2), region = 77 }

// kernel: _lambda_.16
= control target key start
LH: loop header
LB: loop body
LE: loop exit
PB: predicated region body
PF: predicated region fallthrough
CT: control target
= control target key end

     0   :  { %s548_s15 = smov 0   ;;  %s550_s16 = smov 0   ;;  %s615_s0 = inlined_call_operand.vmem [shape: bf16[2,8,128], index: 0, kind: input, shape index: {}]   ;;  %s616_s1 = inlined_call_operand.vmem [shape: bf16[1,128,128], index: 1, kind: input, shape index: {}]   ;;  %s617_s2 = inlined_call_operand.vmem [shape: f32[1,128], index: 2, kind: input, shape index: {}]   ;;  %s618_s3 = inlined_call_operand.vmem [shape: f32[1,128], index: 3, kind: input, shape index: {}]   ;;  %s619_s4 = inlined_call_operand.vmem [shape: bf16[2,8,128], index: 4, kind: output, shape index: {}]  }
   0x1   :  { %s552_s17 = smov 0  }
   0x2 LB: > { %s26_s18 = sadd.s32 1, %s515_s16  ;;  %p419_p0 = scmp.ge.s32.totalorder %s519_s17, 1  ;;  %s519_s17 = sphi %s552_s17, %s14_s17   ;;  %s515_s16 = sphi %s550_s16, %s621_s16   ;;  %s511_s15 = sphi %s548_s15, %s620_s15  }
   0x3   : > { %p28_p1 = scmp.ge.s32.totalorder %s26_s18, 2  ;;  %p175_p2 = scmp.lt.s32.totalorder %s519_s17, 3 }
   0x5   : > { %s623_s18 = smov (%p28_p1, %s26_s18), 0  ;;  %p176_p3 = pnand %p419_p0, %p175_p2 }
   0x6   : > { %v489_v0 = vld [vmem:[%s616_s1] sm:$0xff] (!%p176_p3)   ;;  %v521_v1 = vmov (!%p176_p3), 0.0   ;;  %v490_v2 = vld [vmem:[%s616_s1 + $0x8] sm:$0xff] (!%p176_p3)   ;;  %vm522_vm0 = vmmov (!%p176_p3), 0   ;;  %v491_v3 = vld [vmem:[%s616_s1 + $0x10] sm:$0xff] (!%p176_p3)   ;;  %p202_p4 = scmp.lt.s32.totalorder (!%p176_p3), %s511_s15, 1 }
   0x7   : > { %179 = sbr.rel (%p176_p3) target bundleno = 258 (0x102), region = 36  ;;  %443 = vmatprep.subr.bf16.mxu0 (!%p176_p3), %v521_v1  ;;  %459 = vmatprep.mubr.msk.bf16.mxu0 (!%p176_p3), %vm522_vm0, %v521_v1  ;;  %v492_v4 = vld [vmem:[%s616_s1 + $0x18] sm:$0xff] (!%p176_p3)   ;;  %v493_v5 = vld [vmem:[%s616_s1 + $0x20] sm:$0xff] (!%p176_p3)   ;;  %v494_v6 = vld [vmem:[%s616_s1 + $0x28] sm:$0xff] (!%p176_p3)  }
   0x8   : > { %444 = vmatpush3.bf16.msra.mxu0 (!%p176_p3), %v489_v0  ;;  %v495_v7 = vld [vmem:[%s616_s1 + $0x30] sm:$0xff] (!%p176_p3)   ;;  %v496_v8 = vld [vmem:[%s616_s1 + $0x38] sm:$0xff] (!%p176_p3)   ;;  %v430_v10 = vld [vmem:[%s617_s2] ss:$0 sm:$0xff] (!%p176_p3) }
   0x9   : > { %445 = vmatprep.subr.bf16.mxu0 (!%p176_p3), %v521_v1  ;;  %v431_v12 = vld [vmem:[%s618_s3] ss:$0 sm:$0xff] (!%p176_p3) }
   0xc   : > { %446 = vmatpush3.bf16.msra.mxu0 (!%p176_p3), %v490_v2 }
   0xd   : > { %447 = vmatprep.subr.bf16.mxu0 (!%p176_p3), %v521_v1 }
   0xe   : > { %s625_s15 = smov (!%p202_p4, %s511_s15), 1 }
   0xf   : > { %s420_s7 = sshll.u32 %s625_s15, 2 }
  0x10   : > { %448 = vmatpush3.bf16.msra.mxu0 %v491_v3  ;;  %s205_s12 = scalar_lea.vmem %s615_s0, %s420_s7  ;;  %s212_s22 = scalar_lea.vmem %s619_s4, %s420_s7 }
  0x11   : > { %449 = vmatprep.subr.bf16.mxu0 %v521_v1  ;;  %v219_v9 = vld [vmem:[%s205_s12] sm:$0xf] }
  0x14   : > { %450 = vmatpush3.bf16.msra.mxu0 %v492_v4 }
  0x15   : > { %451 = vmatprep.subr.bf16.mxu0 %v521_v1 }
  0x18   : > { %452 = vmatpush3.bf16.msra.mxu0 %v493_v5 }
  0x19   : > { %453 = vmatprep.subr.bf16.mxu0 %v521_v1 }
  0x1c   : > { %454 = vmatpush3.bf16.msra.mxu0 %v494_v6 }
  0x1d   : > { %455 = vmatprep.subr.bf16.mxu0 %v521_v1 }
  0x20   : > { %456 = vmatpush3.bf16.msra.mxu0 %v495_v7 }
  0x21   : > { %457 = vmatprep.subr.bf16.mxu0 %v521_v1 }
  0x24   : > { %458 = vmatpush3.bf16.msra.mxu0 %v496_v8 }
  0x27   : > { %460 = vmatmul.mubr.bf16.vlgmr.msra.gmra.mrb[0].mxu0 %v219_v9 }
  0xfa   : > { %v318_v11 = vpop.f32.mrb[0].mxu0 }
  0xfb   : > { %v331_v13 = vmul.f32 %v430_v10, %v318_v11  ;;  %v461_v14 = vpop.f32.mrb[1].mxu0 }
  0xfc   : > { %v321_v15 = vpop.f32.mrb[2].mxu0 }
  0xfd   : > { %v339_v16 = vadd.f32 %v431_v12, %v331_v13  ;;  %v462_v17 = vpop.f32.mrb[3].mxu0 }
  0xff   : > { %v340_v18 = vpack.c.bf16 %v339_v16, %v339_v16 }
 0x101   : > { %341 = vst [vmem:[%s212_s22] sm:$0xf] %v340_v18 }
 0x102 PF: > { %s14_s17 = sadd.s32 1, %s519_s17   ;;  %s620_s15 = smov %s515_s16 }
 0x103   : > { %p11_p5 = scmp.ge.s32.totalorder %s14_s17, 4   ;;  %s621_s16 = smov %s623_s18 }
 0x105   :  { %13 = sbr.rel (!%p11_p5) target bundleno = 2 (0x2), region = 67 }

// kernel: _lambda_.15
= control target key start
LH: loop header
LB: loop body
LE: loop exit
PB: predicated region body
PF: predicated region fallthrough
CT: control target
= control target key end

     0   :  { %s990_s18 = smov 0   ;;  %s992_s19 = smov 0   ;;  %s1145_s0 = inlined_call_operand.vmem [shape: bf16[2,10,128], index: 0, kind: input, shape index: {}]   ;;  %s1146_s1 = inlined_call_operand.vmem [shape: bf16[3,128,128], index: 1, kind: input, shape index: {}]   ;;  %s1147_s2 = inlined_call_operand.vmem [shape: f32[1,128], index: 2, kind: input, shape index: {}]   ;;  %s1148_s3 = inlined_call_operand.vmem [shape: f32[1,128], index: 3, kind: input, shape index: {}]   ;;  %s1149_s4 = inlined_call_operand.vmem [shape: bf16[2,8,128], index: 4, kind: output, shape index: {0}]   ;;  %s1150_s5 = inlined_call_operand.vmem [shape: f32[2,1,128], index: 5, kind: output, shape index: {1}]  }
   0x1   :  { %s994_s20 = smov 0  }
   0x2 LB: > { %s28_s21 = sadd.s32 1, %s952_s19  ;;  %p725_p0 = scmp.ge.s32.totalorder %s956_s20, 1  ;;  %s956_s20 = sphi %s994_s20, %s16_s20   ;;  %s952_s19 = sphi %s992_s19, %s1152_s19   ;;  %s948_s18 = sphi %s990_s18, %s1151_s18  }
   0x3   : > { %p30_p1 = scmp.ge.s32.totalorder %s28_s21, 2  ;;  %p204_p2 = scmp.lt.s32.totalorder %s956_s20, 3 }
   0x5   : > { %s1154_s21 = smov (%p30_p1, %s28_s21), 0  ;;  %p205_p3 = pnand %p725_p0, %p204_p2 }
   0x6   : > { %v909_v0 = vld [vmem:[%s1146_s1] sm:$0xff] (!%p205_p3)   ;;  %v958_v1 = vmov (!%p205_p3), 0.0   ;;  %v910_v2 = vld [vmem:[%s1146_s1 + $0x8] sm:$0xff] (!%p205_p3)   ;;  %vm959_vm0 = vmmov (!%p205_p3), 0   ;;  %p237_p4 = scmp.lt.s32.totalorder (!%p205_p3), %s948_s18, 1  ;;  %v911_v3 = vld [vmem:[%s1146_s1 + $0x10] sm:$0xff] (!%p205_p3)  }
   0x7   : > { %208 = sbr.rel (%p205_p3) target bundleno = 306 (0x132), region = 36  ;;  %838 = vmatprep.subr.bf16.mxu0 (!%p205_p3), %v958_v1  ;;  %818 = vmatprep.subr.bf16.mxu1 (!%p205_p3), %v958_v1  ;;  %v917_v4 = vld [vmem:[%s1146_s1 + $0x40] sm:$0xff] (!%p205_p3)   ;;  %v912_v5 = vld [vmem:[%s1146_s1 + $0x18] sm:$0xff] (!%p205_p3)   ;;  %v920_v6 = vld [vmem:[%s1146_s1 + $0x48] sm:$0xff] (!%p205_p3)  }
   0x8   : > { %839 = vmatpush3.bf16.msra.mxu0 (!%p205_p3), %v909_v0  ;;  %854 = vmatprep.mubr.msk.bf16.mxu0 (!%p205_p3), %vm959_vm0, %v958_v1  ;;  %v913_v7 = vld [vmem:[%s1146_s1 + $0x20] sm:$0xff] (!%p205_p3)   ;;  %v922_v8 = vld [vmem:[%s1146_s1 + $0x50] sm:$0xff] (!%p205_p3)   ;;  %v914_v9 = vld [vmem:[%s1146_s1 + $0x28] sm:$0xff] (!%p205_p3)  }
   0x9   : > { %840 = vmatprep.subr.bf16.mxu0 (!%p205_p3), %v958_v1  ;;  %834 = vmatprep.mubr.msk.bf16.mxu1 (!%p205_p3), %vm959_vm0, %v958_v1  ;;  %v924_v10 = vld [vmem:[%s1146_s1 + $0x58] sm:$0xff] (!%p205_p3)   ;;  %v915_v11 = vld [vmem:[%s1146_s1 + $0x30] sm:$0xff] (!%p205_p3)   ;;  %v926_v13 = vld [vmem:[%s1146_s1 + $0x60] sm:$0xff] (!%p205_p3)  }
   0xa   : > { %819 = vmatpush3.bf16.msra.mxu1 (!%p205_p3), %v917_v4  ;;  %v916_v16 = vld [vmem:[%s1146_s1 + $0x38] sm:$0xff] (!%p205_p3)   ;;  %v928_v17 = vld [vmem:[%s1146_s1 + $0x68] sm:$0xff] (!%p205_p3)   ;;  %v919_v19 = vld [vmem:[%s1146_s1 + $0x80] sm:$0xff] (!%p205_p3)  }
   0xb   : > { %820 = vmatprep.subr.bf16.mxu1 (!%p205_p3), %v958_v1  ;;  %v930_v20 = vld [vmem:[%s1146_s1 + $0x70] sm:$0xff] (!%p205_p3)   ;;  %v921_v23 = vld [vmem:[%s1146_s1 + $0x88] sm:$0xff] (!%p205_p3)   ;;  %v932_v24 = vld [vmem:[%s1146_s1 + $0x78] sm:$0xff] (!%p205_p3)  }
   0xc   : > { %841 = vmatpush3.bf16.msra.mxu0 (!%p205_p3), %v910_v2  ;;  %v923_v26 = vld [vmem:[%s1146_s1 + $0x90] sm:$0xff] (!%p205_p3)   ;;  %v925_v27 = vld [vmem:[%s1146_s1 + $0x98] sm:$0xff] (!%p205_p3)   ;;  %v927_v28 = vld [vmem:[%s1146_s1 + $0xa0] sm:$0xff] (!%p205_p3)  }
   0xd   : > { %842 = vmatprep.subr.bf16.mxu0 (!%p205_p3), %v958_v1  ;;  %v929_v29 = vld [vmem:[%s1146_s1 + $0xa8] sm:$0xff] (!%p205_p3)   ;;  %v931_v30 = vld [vmem:[%s1146_s1 + $0xb0] sm:$0xff] (!%p205_p3)   ;;  %v933_v31 = vld [vmem:[%s1146_s1 + $0xb8] sm:$0xff] (!%p205_p3)  }
   0xe   : > { %s1156_s18 = smov (!%p237_p4, %s948_s18), 1  ;;  %821 = vmatpush3.bf16.msra.mxu1 %v920_v6  ;;  %v786_v38 = vld [vmem:[%s1147_s2] ss:$0 sm:$0xff] }
   0xf   : > { %s1030_s30 = scalar_lea.vmem %s1150_s5, %s1156_s18  ;;  %822 = vmatprep.subr.bf16.mxu1 %v958_v1  ;;  %s790_s22 = sshll.u32 %s1156_s18, 3  ;;  %v787_v41 = vld [vmem:[%s1148_s3] ss:$0 sm:$0xff] }
  0x10   : > { %612 = vst [vmem:[%s1030_s30] sm:$0x1] %v958_v1  ;;  %843 = vmatpush3.bf16.msra.mxu0 %v911_v3  ;;  %s241_s29 = scalar_lea.vmem %s1145_s0, %s790_s22  ;;  %s728_s16 = sshll.u32 %s1156_s18, 2 }
  0x11   : > { %844 = vmatprep.subr.bf16.mxu0 %v958_v1  ;;  %v259_v12 = vld [vmem:[%s241_s29 + $0x4] sm:$0x1]  ;;  %v258_v14 = vld [vmem:[%s241_s29] sm:$0xf]  ;;  %s248_s23 = scalar_lea.vmem %s1149_s4, %s728_s16 }
  0x12   : > { %823 = vmatpush3.bf16.msra.mxu1 %v922_v8  ;;  %v745_v15 = vcombine.low %v258_v14, %v259_v12 }
  0x13   : > { %824 = vmatprep.subr.bf16.mxu1 %v958_v1 }
  0x14   : > { %845 = vmatpush3.bf16.msra.mxu0 %v912_v5  ;;  %v301_v18 = vshll.u32 %v745_v15, 16  ;;  %v299_v21 = vshrl.u32 %v745_v15, 16  ;;  %v499_v32 = vrot.slane %v745_v15, 1 }
  0x15   : > { %846 = vmatprep.subr.bf16.mxu0 %v958_v1 }
  0x16   : > { %825 = vmatpush3.bf16.msra.mxu1 %v924_v10  ;;  %v303_v22 = vrot.slane %v301_v18, 1 }
  0x17   : > { %826 = vmatprep.subr.bf16.mxu1 %v958_v1  ;;  %v613_v53 = vld [vmem:[%s1030_s30] sm:$0x1] }
  0x18   : > { %847 = vmatpush3.bf16.msra.mxu0 %v913_v7  ;;  %v304_v25 = vor.u32 %v303_v22, %v299_v21 }
  0x19   : > { %848 = vmatprep.subr.bf16.mxu0 %v958_v1 }
  0x1a   : > { %827 = vmatpush3.bf16.msra.mxu1 %v926_v13 }
  0x1b   : > { %828 = vmatprep.subr.bf16.mxu1 %v958_v1 }
  0x1c   : > { %849 = vmatpush3.bf16.msra.mxu0 %v914_v9 }
  0x1d   : > { %850 = vmatprep.subr.bf16.mxu0 %v958_v1 }
  0x1e   : > { %829 = vmatpush3.bf16.msra.mxu1 %v928_v17 }
  0x1f   : > { %830 = vmatprep.subr.bf16.mxu1 %v958_v1 }
  0x20   : > { %851 = vmatpush3.bf16.msra.mxu0 %v915_v11 }
  0x21   : > { %852 = vmatprep.subr.bf16.mxu0 %v958_v1 }
  0x22   : > { %831 = vmatpush3.bf16.msra.mxu1 %v930_v20 }
  0x23   : > { %832 = vmatprep.subr.bf16.mxu1 %v958_v1 }
  0x24   : > { %853 = vmatpush3.bf16.msra.mxu0 %v916_v16 }
  0x25   : > { %858 = vmatprep.subr.bf16.mxu0 %v958_v1 }
  0x26   : > { %833 = vmatpush3.bf16.msra.mxu1 %v932_v24 }
  0x27   : > { %855 = vmatmul.mubr.bf16.vlgmr.msra.gmra.mrb[0].mxu0 %v258_v14 }
  0x28   : > { %859 = vmatpush3.bf16.msra.mxu0 %v919_v19  ;;  %874 = vmatprep.mubr.msk.bf16.mxu0 %vm959_vm0, %v958_v1 }
  0x29   : > { %860 = vmatprep.subr.bf16.mxu0 %v958_v1  ;;  %835 = vmatmul.mubr.bf16.vlgmr.msra.gmra.mrb[0].mxu1 %v304_v25 }
  0x2c   : > { %861 = vmatpush3.bf16.msra.mxu0 %v921_v23 }
  0x2d   : > { %862 = vmatprep.subr.bf16.mxu0 %v958_v1 }
  0x30   : > { %863 = vmatpush3.bf16.msra.mxu0 %v923_v26 }
  0x31   : > { %864 = vmatprep.subr.bf16.mxu0 %v958_v1 }
  0x34   : > { %865 = vmatpush3.bf16.msra.mxu0 %v925_v27 }
  0x35   : > { %866 = vmatprep.subr.bf16.mxu0 %v958_v1 }
  0x38   : > { %867 = vmatpush3.bf16.msra.mxu0 %v927_v28 }
  0x39   : > { %868 = vmatprep.subr.bf16.mxu0 %v958_v1 }
  0x3c   : > { %869 = vmatpush3.bf16.msra.mxu0 %v929_v29 }
  0x3d   : > { %870 = vmatprep.subr.bf16.mxu0 %v958_v1 }
  0x40   : > { %871 = vmatpush3.bf16.msra.mxu0 %v931_v30 }
  0x41   : > { %872 = vmatprep.subr.bf16.mxu0 %v958_v1 }
  0x44   : > { %873 = vmatpush3.bf16.msra.mxu0 %v933_v31 }
  0x47   : > { %875 = vmatmul.mubr.bf16.vlgmr.msra.gmra.mrb[0].mxu0 %v499_v32 }
  0xfc   : > { %v388_v33 = vpop.f32.mrb[0].mxu1 }
  0xfd   : > { %v836_v34 = vpop.f32.mrb[1].mxu1 }
  0xfe   : > { %v391_v35 = vpop.f32.mrb[2].mxu1 }
  0xff   : > { %v837_v36 = vpop.f32.mrb[3].mxu1 }
 0x11a   : > { %v583_v37 = vpop.f32.mrb[0].mxu0 }
 0x11b   : > { %v878_v39 = vadd.f32 %v583_v37, %v388_v33  ;;  %v876_v40 = vpop.f32.mrb[1].mxu0 }
 0x11c   : > { %v586_v42 = vpop.f32.mrb[2].mxu0 }
 0x11d   : > { %v597_v43 = vmul.f32 %v878_v39, %v786_v38  ;;  %v877_v44 = vpop.f32.mrb[3].mxu0 }
 0x11f   : > { %v605_v45 = vadd.f32 %v787_v41, %v597_v43 }
 0x121   : > { %v606_v46 = vpack.c.bf16 %v605_v45, %v605_v45  ;;  %v614_v47 = vand.u32 2147483647, %v605_v45 }
 0x123   : > { %607 = vst [vmem:[%s248_s23] sm:$0xf] %v606_v46  ;;  %v615_v48 = vrot.slane %v614_v47, 4 }
 0x125   : > { %v616_v49 = vadd.f32 %v615_v48, %v614_v47 }
 0x127   : > { %v617_v50 = vrot.slane %v616_v49, 2 }
 0x129   : > { %v618_v51 = vadd.f32 %v617_v50, %v616_v49 }
 0x12b   : > { %v619_v52 = vrot.slane %v618_v51, 1 }
 0x12d   : > { %v620_v54 = vadd.f32 %v619_v52, %v618_v51 }
 0x12f   : > { %v621_v55 = vadd.f32 %v620_v54, %v613_v53 }
 0x131   : > { %622 = vst [vmem:[%s1030_s30] sm:$0x1] %v621_v55 }
 0x132 PF: > { %s16_s20 = sadd.s32 1, %s956_s20   ;;  %s1151_s18 = smov %s952_s19 }
 0x133   : > { %p13_p5 = scmp.ge.s32.totalorder %s16_s20, 4   ;;  %s1152_s19 = smov %s1154_s21 }
 0x135   :  { %15 = sbr.rel (!%p13_p5) target bundleno = 2 (0x2), region = 85 }

// kernel: _lambda_.17
= control target key start
LH: loop header
LB: loop body
LE: loop exit
PB: predicated region body
PF: predicated region fallthrough
CT: control target
= control target key end

     0   :  { %10 = vsyncpa [#allocation3], 0  ;;  %s744_s0 = inlined_call_operand.vmem [shape: bf16[2,8,128], index: 0, kind: input, shape index: {}]   ;;  %s745_s1 = inlined_call_operand.vmem [shape: bf16[2,8,128], index: 1, kind: input, shape index: {}]   ;;  %s746_s2 = inlined_call_operand.vmem [shape: f32[2,1,128], index: 2, kind: input, shape index: {}]   ;;  %s747_s3 = inlined_call_operand.hbm [shape: bf16[2,8,128], index: 3, kind: output, shape index: {0}]   ;;  %s748_s4 = inlined_call_operand.vmem [shape: f32[2,1,128], index: 4, kind: output, shape index: {1}]  }
   0x1   :  { %12 = vsyncpa [#allocation3 + $0x1], 0  ;;  %s618_s15 = smov 0   ;;  %s620_s16 = smov 0  }
   0x2   :  { %s622_s17 = smov 0   ;;  %s624_s18 = smov 0  }
   0x3   :  { %s626_s19 = smov 0   ;;  %s628_s20 = smov 0  }
   0x4 LB: > { %s443_s21 = sadd.s32 4294967295, %s589_s20   ;;  %s444_s22 = sadd.s32 4294967294, %s589_s20   ;;  %s589_s20 = sphi %s628_s20, %s18_s20   ;;  %s585_s19 = sphi %s626_s19, %s755_s19   ;;  %s581_s18 = sphi %s624_s18, %s754_s18   ;;  %s577_s17 = sphi %s622_s17, %s753_s17   ;;  %s573_s16 = sphi %s620_s16, %s752_s16   ;;  %s569_s15 = sphi %s618_s15, %s751_s15  }
   0x5   : > { %s30_s23 = sadd.s32 1, %s585_s19  ;;  %s121_s24 = sadd.s32 1, %s577_s17 }
   0x6   : > { %p32_p0 = scmp.ge.s32.totalorder %s30_s23, 2  ;;  %p131_p1 = scmp.ne.s32.totalorder %s577_s17, %s573_s16 }
   0x7   : > { %p132_p2 = scmp.eq.s32.totalorder %s443_s21, 1  ;;  %p137_p3 = scmp.ne.s32.totalorder %s573_s16, %s569_s15 }
   0x8   : > { %s757_s23 = smov (%p32_p0, %s30_s23), 0  ;;  %p138_p5 = scmp.eq.s32.totalorder %s444_s22, 1 }
   0x9   : > { %p658_p4 = por %p132_p2, %p131_p1  ;;  %s116_s26 = ssub.s32 %s585_s19, %s757_s23 }
   0xa   : > { %p447_p6 = scmp.ge.s32.totalorder %s589_s20, 1  ;;  %p119_p7 = scmp.eq.s32.totalorder %s116_s26, 0 }
   0xb   : > { %p665_p8 = por %p138_p5, %p137_p3  ;;  %p208_p9 = scmp.lt.s32.totalorder %s589_s20, 3 }
   0xc   : > { %s671_s28 = scalar_select %p119_p7, %s577_s17, %s121_s24  }
   0xd   : > { %p209_p10 = pnand %p447_p6, %p208_p9 }
   0xe   : > { %p249_p11 = scmp.lt.s32.totalorder (!%p209_p10), %s581_s18, 1  ;;  %v276_v0 = vlaneseq (!%p209_p10)  ;;  %v591_v4 = vmov (!%p209_p10), 0.0   ;;  %s241_s24 = sand.u32 (!%p209_p10), 1, %s573_s16  }
   0xf   : > { %212 = sbr.rel (%p209_p10) target bundleno = 66 (0x42), region = 32  ;;  %s448_s26 = sshll.u32 (!%p209_p10), %s241_s24, 2 }
  0x10   : > { %v277_v1 = vshrl.u32 (!%p209_p10), %v276_v0, 7  ;;  %s452_s5 = sshll.u32 (!%p209_p10), %s581_s18, 6 }
  0x11   : > { %s697_s8 = scalar_lea.hbm (!%p209_p10), %s747_s3, %s452_s5 }
  0x12   : > { %v278_v2 = vsub.s32 (!%p209_p10), 0, %v277_v1 }
  0x16   : > { %s250_s29 = scalar_select %p249_p11, %s581_s18, 1 }
  0x17   : > { %s592_s18 = smov [#allocation2]  }
  0x18   : > { %s265_s6 = scalar_lea.vmem %s746_s2, %s250_s29  ;;  %s681_s9 = scalar_lea.vmem %s748_s4, %s250_s29 }
  0x19   : > { %v273_v3 = vld [vmem:[%s265_s6] sm:$0x1]  ;;  %298 = vst [vmem:[%s681_s9] sm:$0x1] %v591_v4  ;;  %s449_s10 = sshll.u32 %s250_s29, 2  ;;  %s243_s29 = scalar_lea.vmem [#allocation2], %s448_s26 }
  0x1a   : > { %v274_v5 = vsub.f32 0.0, %v273_v3  ;;  %s255_s13 = scalar_lea.vmem %s744_s0, %s449_s10  ;;  %s262_s22 = scalar_lea.vmem %s745_s1, %s449_s10  ;;  %v286_v8 = vrot.slane %v273_v3, %v278_v2 }
  0x1b   : > { %v269_v6 = vld [vmem:[%s255_s13] sm:$0xf]  ;;  %s326_s30 = sshll.u32 %s243_s29, 4  ;;  %s309_s10 = scalar_lea.sflag [#allocation3], %s241_s24  ;;  %s692_s30 = int_to_ptr.vmem [resolvable:$true] %s326_s30 }
  0x1c   : > { %v279_v7 = vrot.slane %v274_v5, %v278_v2  ;;  %v270_v9 = vunpack.c.l.bf16 %v269_v6  ;;  %v271_v10 = vld [vmem:[%s262_s22] sm:$0xf]  ;;  %s511_s11 = scalar_lea.vmem %s692_s30, 64  ;;  %s515_s12 = sshll.u32 %s592_s18, 4  ;;  %s516_s12 = int_to_ptr.vmem [resolvable:$false] %s515_s12 }
  0x1d   : > { %v272_v12 = vunpack.c.l.bf16 %v271_v10  ;;  %p512_p12 = scmp.ne.s32.totalorder %s692_s30, %s511_s11  ;;  %s517_s13 = scalar_lea.vmem %s516_s12, 128 }
  0x1e   : > { %v281_v11 = vmax.f32 %v279_v7, %v270_v9  ;;  %p518_p1 = scmp.lt.s32.totalorder %s692_s30, %s516_s12  ;;  %p519_p2 = scmp.lt.s32.totalorder %s517_s13, %s511_s11 }
  0x1f   : > { %p513_p13 = pnand %p512_p12, %p658_p4 }
  0x20   : > { %v288_v13 = vmin.f32 %v286_v8, %v281_v11  ;;  %p520_p3 = por %p519_p2, %p518_p1 }
  0x21   : > { %p514_p0 = pneg %p513_p13 }
  0x22   : > { %v289_v14 = vsub.f32 %v270_v9, %v288_v13 }
  0x23   : > { %p521_p5 = pnand %p520_p3, %p514_p0 }
  0x24   : > { %v290_v15 = vadd.f32 %v289_v14, %v272_v12 }
  0x26   : > { %v291_v16 = vmax.f32 %v290_v15, 0.0 }
  0x28   : > { %v292_v17 = vpack.c.bf16 %v291_v16, %v291_v16  ;;  %v300_v18 = vrot.slane %v291_v16, 4 }
  0x2a   : > { %293 = vst [vmem:[%s243_s29] sm:$0xf] %v292_v17  ;;  %v301_v19 = vadd.f32 %v300_v18, %v291_v16 }
  0x2b   : > { %524 = shalt.err (!%p521_p5)
}
  0x2c   : > { %s525_s14 = scalar_lea.hbm %s697_s8, 64  ;;  %s529_s24 = scalar_lea.hbm %s747_s3, 128 }
  0x2d   : > { %p526_p6 = scmp.ne.s32.totalorder %s697_s8, %s525_s14  ;;  %p530_p10 = scmp.lt.u32.totalorder %s697_s8, %s747_s3 }
  0x2e   : > { %p531_p11 = scmp.lt.u32.totalorder %s529_s24, %s525_s14  ;;  %p533_p13 = scmp.lt.u32.totalorder %s525_s14, %s697_s8 }
  0x2f   : > { %p527_p7 = pnand %p526_p6, %p658_p4 }
  0x30   : > { %p532_p12 = por %p531_p11, %p530_p10 }
  0x31   : > { %p528_p9 = pneg %p527_p7 }
  0x32   : > { %p534_p0 = por %p533_p13, %p532_p12 }
  0x34   : > { %p535_p1 = pnand %p534_p0, %p528_p9 }
  0x36   : > { %538 = shalt.err (!%p535_p1)
}
  0x37   : > { %455 = dma.vmem_to_hbm [thread:$0]  (%p658_p4), %s692_s30, 64, %s697_s8, %s309_s10   ;;  %v302_v20 = vrot.slane %v301_v19, 2  ;;  %v299_v23 = vld [vmem:[%s681_s9] sm:$0x1] }
  0x39   : > { %v303_v21 = vadd.f32 %v302_v20, %v301_v19 }
  0x3b   : > { %v304_v22 = vrot.slane %v303_v21, 1 }
  0x3d   : > { %v305_v24 = vadd.f32 %v304_v22, %v303_v21 }
  0x3f   : > { %v306_v25 = vadd.f32 %v305_v24, %v299_v23 }
  0x41   : > { %307 = vst [vmem:[%s681_s9] sm:$0x1] %v306_v25 }
  0x42 PF: > { %p461_p2 = scmp.ge.s32.totalorder %s589_s20, 2  ;;  %s341_s5 = sand.u32 1, %s569_s15  }
  0x43   : > { %s342_s25 = scalar_lea.sflag [#allocation3], %s341_s5 }
  0x44   : > { %p458_p3 = pnand %p461_p2, %p665_p8 }
  0x46   : > { %564 = dma.done.wait (!%p458_p3), %s342_s25, 64  }
  0x47   : > { %566 = vsyncadd (!%p458_p3), %s342_s25, 4294967232  ;;  %s18_s20 = sadd.s32 1, %s589_s20   ;;  %s751_s15 = smov %s573_s16 }
  0x48   : > { %p15_p4 = scmp.ge.s32.totalorder %s18_s20, 4   ;;  %s752_s16 = smov %s577_s17 }
  0x49   : > { %s753_s17 = smov %s671_s28  ;;  %s754_s18 = smov %s585_s19 }
  0x4a   : > { %s755_s19 = smov %s757_s23  ;;  %17 = sbr.rel (!%p15_p4) target bundleno = 4 (0x4), region = 89 }
  0x51   :  { %353 = vsyncpa [#allocation3], 1 }
  0x52   :  { %355 = vsyncpa [#allocation3 + $0x1], 1 }

</bundles_post_ra>
